<compile_context>
chip_gen: v6e
topology: v6e:2x2x1
jax: 0.10.0
libtpu: 0.0.40
codegen_flags: <defaults>
</compile_context>

<pallas_src>
import math
import jax
import jax.numpy as jnp
from jax.experimental import pallas as pl
from jax.experimental.pallas import tpu as pltpu

# ----- model configuration (small, consistent with the module defaults scaled down) -----
N_LAYERS = 2
N_HEADS = 2
HIDDEN = 32
INNER = 64
HEAD_DIM = HIDDEN // N_HEADS
EPS = 1e-12
INIT_RANGE = 0.02
N_ITEMS = 50
MAX_SEQ = 8
ATTN_SCALE = 1.0 / math.sqrt(HEAD_DIM)   # 0.25 — exact power of two


def _layer_norm(x, w, b):
    # torch.nn.LayerNorm semantics: biased variance over last dim, eps inside sqrt.
    mu = jnp.mean(x, axis=-1, keepdims=True)
    var = jnp.mean(jnp.square(x - mu), axis=-1, keepdims=True)
    return (x - mu) * jax.lax.rsqrt(var + EPS) * w + b


def encoder_kernel(x_ref, mask_ref, idx_ref,      # (B,S,H) activations, (B,1,S) mask, (B,1,1) gather idx
                   ln_in_ref,                     # (2,H)    model input LN [gamma; beta]
                   vecs_ref,                      # (L,10,H) per-layer: 8 LN params + bo + b2
                   wqkv_ref, bqkv_ref,            # (L,H,3H) fused [wq*scale|wk|wv], (L,1,3H) fused bias
                   wo_ref,                        # (L,H,H)  attention output projection
                   w1_ref, b1_ref, w2_ref,        # (L,H,INNER), (L,1,INNER), (L,INNER,H)
                   out_ref):                      # (B,H) gathered final hidden states
    B, S, H = x_ref.shape
    BS = B * S

    # All token rows batched through the projections as one (B*S, H) slab.
    x = x_ref[...].reshape(BS, H)

    # Hoist the mask broadcast out of the layer/head loops (JAX does not CSE broadcast_in_dim).
    mask_bss = jnp.broadcast_to(mask_ref[...], (B, S, S))

    ln_in = ln_in_ref[...]                                    # (2, H)
    h = _layer_norm(x, ln_in[0:1], ln_in[1:2])                # model-level input LayerNorm

    for l in range(N_LAYERS):
        vec = vecs_ref[l]                                     # (10, H)
        # ---- multi-head self-attention block (pre-LN + internal post-LN, as in reference) ----
        a_in = _layer_norm(h, vec[0:1], vec[1:2])             # attention_layer_norm

        # Fused lane-dense QKV: one (BS,32)x(32,96) MXU push + one 96-lane bias add.
        qkv = jnp.dot(a_in, wqkv_ref[l], preferred_element_type=jnp.float32) + bqkv_ref[l]

        ctx_parts = []
        for hd in range(N_HEADS):
            lo = hd * HEAD_DIM
            q_h = qkv[:, 0 * H + lo: 0 * H + lo + HEAD_DIM].reshape(B, S, HEAD_DIM)
            k_h = qkv[:, 1 * H + lo: 1 * H + lo + HEAD_DIM].reshape(B, S, HEAD_DIM)
            v_h = qkv[:, 2 * H + lo: 2 * H + lo + HEAD_DIM].reshape(B, S, HEAD_DIM)

            s = jnp.einsum('bqd,bkd->bqk', q_h, k_h,
                           preferred_element_type=jnp.float32)                   # (B, S, S)
            s = s + mask_bss                                                     # scale folded into wq/bq
            m = jnp.max(s, axis=-1, keepdims=True)
            e = jnp.exp(s - m)
            p = e * pl.reciprocal(jnp.sum(e, axis=-1, keepdims=True), approx=True)
            ctx_h = jnp.einsum('bqk,bkd->bqd', p, v_h,
                               preferred_element_type=jnp.float32)               # (B, S, HD)
            ctx_parts.append(ctx_h.reshape(BS, HEAD_DIM))

        # Lane-concat the per-head contexts (2 x 16 -> 32 lanes, within one vreg tile)
        # and do a single K=32 output projection.
        ctx = jnp.concatenate(ctx_parts, axis=-1)                                # (BS, H)
        attn = jnp.dot(ctx, wo_ref[l], preferred_element_type=jnp.float32) + vec[8:9]
        attn_out = _layer_norm(attn + a_in, vec[2:3], vec[3:4])                  # MHA internal LN
        a = attn_out + h                                                         # outer residual

        # ---- feed-forward block ----
        f_in = _layer_norm(a, vec[4:5], vec[5:6])                                # ffn_layer_norm
        ff1 = jnp.dot(f_in, w1_ref[l], preferred_element_type=jnp.float32) + b1_ref[l]
        ff1 = jax.nn.gelu(ff1, approximate=True)                                 # tanh GELU -> EUP slot
        ff2 = jnp.dot(ff1, w2_ref[l], preferred_element_type=jnp.float32) + vec[9:10]
        ff_out = _layer_norm(ff2 + f_in, vec[6:7], vec[7:8])                     # FF internal LN
        h = ff_out + a                                                           # outer residual

    # reference forward takes trm_output[-1] (no final_layer_norm) and gathers position idx[b];
    # vectorized gather: one select + sublane reduce + one dense (B, H) store.
    h3 = h.reshape(B, S, H)
    pos = jax.lax.broadcasted_iota(jnp.int32, (B, S, H), 1)
    sel = (pos == idx_ref[...]).astype(jnp.float32)                              # (B, S, H) one-hot rows
    out_ref[...] = jnp.sum(h3 * sel, axis=1)                                     # (B, H)


# ----- wrapper: weight packing (done once) + pallas_call -----
def pack_params(p):
    pk = {'item_emb': p['item_emb'], 'pos_emb': p['pos_emb']}
    pk['ln_in'] = jnp.concatenate([p['ln_in_w'], p['ln_in_b']], axis=0)          # (2, H)

    # per-layer H-wide vectors: 8 LN params + bo + b2  ->  (L, 10, H)
    pk['vecs'] = jnp.concatenate(
        [p['ln_pa_w'], p['ln_pa_b'], p['ln_a_w'], p['ln_a_b'],
         p['ln_pf_w'], p['ln_pf_b'], p['ln_f_w'], p['ln_f_b'],
         p['bo'], p['b2']], axis=1)

    # fused lane-dense QKV weights/bias; 1/sqrt(head_dim) folded into the q block
    pk['wqkv'] = jnp.concatenate([p['wq'] * ATTN_SCALE, p['wk'], p['wv']], axis=2)   # (L, H, 3H)
    pk['bqkv'] = jnp.concatenate([p['bq'] * ATTN_SCALE, p['bk'], p['bv']], axis=2)   # (L, 1, 3H)
    pk['wo'] = p['wo']                                                               # (L, H, H)

    pk['w1'], pk['b1'], pk['w2'] = p['w1'], p['b1'], p['w2']
    return pk


def transformer_rec_forward(item_seq, item_seq_len, pk):
    B, S = item_seq.shape
    H = HIDDEN

    # ---- embedding + mask glue (plain JAX gathers) ----
    item_emb = jnp.take(pk['item_emb'], item_seq, axis=0)                       # (B, S, H)
    pos_emb = pk['pos_emb'][:S][None, :, :]                                     # (1, S, H)
    x = (item_emb + pos_emb).astype(jnp.float32)
    mask = ((item_seq == 0).astype(jnp.float32) * (-10000.0))[:, None, :]       # (B, 1, S)
    gather_idx = jnp.clip(item_seq_len - 1, 0, S - 1).astype(jnp.int32).reshape(B, 1, 1)

    weights = [pk['ln_in'], pk['vecs'], pk['wqkv'], pk['bqkv'], pk['wo'],
               pk['w1'], pk['b1'], pk['w2']]

    grid_spec = pltpu.PrefetchScalarGridSpec(
        num_scalar_prefetch=0,
        grid=(1,),                              # single step: whole (B,S,H) slab resident in VMEM
        in_specs=[pl.BlockSpec((B, S, H), lambda i: (0, 0, 0)),
                  pl.BlockSpec((B, 1, S), lambda i: (0, 0, 0)),
                  pl.BlockSpec((B, 1, 1), lambda i: (0, 0, 0))]
                 + [pl.BlockSpec(w.shape, lambda i, n=w.ndim: (0,) * n) for w in weights],
        out_specs=pl.BlockSpec((B, H), lambda i: (0, 0)),
    )

    return pl.pallas_call(
        encoder_kernel,
        out_shape=jax.ShapeDtypeStruct((B, H), jnp.float32),
        grid_spec=grid_spec,
        compiler_params=pltpu.CompilerParams(dimension_semantics=("arbitrary",)),
    )(x, mask, gather_idx, *weights)                                            # (B, H)


# ----- deterministic parameter init (mirrors _init_weights; biases nonzero to exercise packing) -----
def init_params(key):
    ks = iter(jax.random.split(key, 80))

    def normal(shape):
        return (INIT_RANGE * jax.random.normal(next(ks), shape)).astype(jnp.float32)

    def stack_w(in_dim, out_dim):
        # nn.Linear weight stored transposed as (in, out) so the kernel does x @ W
        return jnp.stack([normal((in_dim, out_dim)) for _ in range(N_LAYERS)])

    ones_ln = lambda: jnp.ones((N_LAYERS, 1, HIDDEN), jnp.float32)
    zeros_ln = lambda: jnp.zeros((N_LAYERS, 1, HIDDEN), jnp.float32)

    p = {}
    p['item_emb'] = normal((N_ITEMS, HIDDEN))
    p['pos_emb'] = normal((MAX_SEQ, HIDDEN))
    p['ln_in_w'] = jnp.ones((1, HIDDEN), jnp.float32)
    p['ln_in_b'] = jnp.zeros((1, HIDDEN), jnp.float32)
    p['ln_pa_w'], p['ln_pa_b'] = ones_ln(), zeros_ln()
    p['ln_a_w'], p['ln_a_b'] = ones_ln(), zeros_ln()
    p['ln_pf_w'], p['ln_pf_b'] = ones_ln(), zeros_ln()
    p['ln_f_w'], p['ln_f_b'] = ones_ln(), zeros_ln()
    p['wq'], p['bq'] = stack_w(HIDDEN, HIDDEN), normal((N_LAYERS, 1, HIDDEN))
    p['wk'], p['bk'] = stack_w(HIDDEN, HIDDEN), normal((N_LAYERS, 1, HIDDEN))
    p['wv'], p['bv'] = stack_w(HIDDEN, HIDDEN), normal((N_LAYERS, 1, HIDDEN))
    p['wo'], p['bo'] = stack_w(HIDDEN, HIDDEN), normal((N_LAYERS, 1, HIDDEN))
    p['w1'], p['b1'] = stack_w(HIDDEN, INNER), normal((N_LAYERS, 1, INNER))
    p['w2'], p['b2'] = stack_w(INNER, HIDDEN), normal((N_LAYERS, 1, HIDDEN))
    # TODO(synk): final_layer_norm / loss heads (BPR, CE) are not part of forward(); omitted.
    return p


# ----- pure-JAX reference (same math, raw weights, exact erf GELU) for a correctness check -----
def reference_forward(item_seq, item_seq_len, p):
    B, S = item_seq.shape
    x = jnp.take(p['item_emb'], item_seq, axis=0) + p['pos_emb'][:S][None]
    mask = ((item_seq == 0).astype(jnp.float32) * (-10000.0))[:, None, :]       # (B,1,S)
    h = _layer_norm(x, p['ln_in_w'][0], p['ln_in_b'][0])
    for l in range(N_LAYERS):
        a_in = _layer_norm(h, p['ln_pa_w'][l], p['ln_pa_b'][l])
        q = a_in @ p['wq'][l] + p['bq'][l]
        k = a_in @ p['wk'][l] + p['bk'][l]
        v = a_in @ p['wv'][l] + p['bv'][l]
        qh = q.reshape(B, S, N_HEADS, HEAD_DIM).transpose(0, 2, 1, 3)
        kh = k.reshape(B, S, N_HEADS, HEAD_DIM).transpose(0, 2, 1, 3)
        vh = v.reshape(B, S, N_HEADS, HEAD_DIM).transpose(0, 2, 1, 3)
        s = jnp.einsum('bhqd,bhkd->bhqk', qh, kh) / math.sqrt(HEAD_DIM) + mask[:, :, None, :]
        pr = jax.nn.softmax(s, axis=-1)
        ctx = jnp.einsum('bhqk,bhkd->bhqd', pr, vh).transpose(0, 2, 1, 3).reshape(B, S, HIDDEN)
        attn_h = ctx @ p['wo'][l] + p['bo'][l]
        attn_out = _layer_norm(attn_h + a_in, p['ln_a_w'][l], p['ln_a_b'][l])
        a = attn_out + h
        f_in = _layer_norm(a, p['ln_pf_w'][l], p['ln_pf_b'][l])
        ff = jax.nn.gelu(f_in @ p['w1'][l] + p['b1'][l], approximate=False) @ p['w2'][l] + p['b2'][l]
        h = _layer_norm(ff + f_in, p['ln_f_w'][l], p['ln_f_b'][l]) + a
    gi = jnp.clip(item_seq_len - 1, 0, S - 1)
    return h[jnp.arange(B), gi]


if __name__ == "__main__":
    key = jax.random.PRNGKey(0)
    pkey, skey = jax.random.split(key)
    raw_params = init_params(pkey)
    packed = pack_params(raw_params)

    B, S = 2, MAX_SEQ
    item_seq_len = jnp.array([5, 8], dtype=jnp.int32)
    rand_items = jax.random.randint(skey, (B, S), 1, N_ITEMS, dtype=jnp.int32)
    positions = jnp.arange(S)[None, :]
    item_seq = jnp.where(positions < item_seq_len[:, None], rand_items, 0)      # zero-padded sequences

    out = jax.block_until_ready(transformer_rec_forward(item_seq, item_seq_len, packed))
    ref = jax.block_until_ready(reference_forward(item_seq, item_seq_len, raw_params))

    assert out.shape == (B, HIDDEN)
    # tolerance accommodates pl.reciprocal(approx=True) softmax denom + tanh-GELU vs erf reference
    assert jnp.allclose(out, ref, rtol=2e-3, atol=2e-3), "mismatch vs pure-JAX reference"

    print("KERNEL_OK")
</pallas_src>

<mosaic_0001>
module attributes {stable_mosaic.version = 11 : i64} {
  func.func @encoder_kernel(%arg0: i32, %arg1: memref<2x8x32xf32, #tpu.memory_space<vmem>>, %arg2: memref<2x1x8xf32, #tpu.memory_space<vmem>>, %arg3: memref<2x1x1xi32, #tpu.memory_space<vmem>>, %arg4: memref<2x32xf32, #tpu.memory_space<vmem>>, %arg5: memref<2x10x32xf32, #tpu.memory_space<vmem>>, %arg6: memref<2x32x96xf32, #tpu.memory_space<vmem>>, %arg7: memref<2x1x96xf32, #tpu.memory_space<vmem>>, %arg8: memref<2x32x32xf32, #tpu.memory_space<vmem>>, %arg9: memref<2x32x64xf32, #tpu.memory_space<vmem>>, %arg10: memref<2x1x64xf32, #tpu.memory_space<vmem>>, %arg11: memref<2x64x32xf32, #tpu.memory_space<vmem>>, %arg12: memref<2x32xf32, #tpu.memory_space<vmem>>) attributes {dimension_semantics = [#tpu.dimension_semantics<arbitrary>], iteration_bounds = array<i64: 1>, scalar_prefetch = 0 : i64, scratch_operands = 0 : i64, tpu.core_type = #tpu.core_type<tc>, window_params = [{pipeline_mode = #tpu.pipeline_mode<synchronous>, transform_indices = @transform_0, window_bounds = array<i64: 2, 8, 32>}, {pipeline_mode = #tpu.pipeline_mode<synchronous>, transform_indices = @transform_1, window_bounds = array<i64: 2, 1, 8>}, {pipeline_mode = #tpu.pipeline_mode<synchronous>, transform_indices = @transform_2, window_bounds = array<i64: 2, 1, 1>}, {pipeline_mode = #tpu.pipeline_mode<synchronous>, transform_indices = @transform_3, window_bounds = array<i64: 2, 32>}, {pipeline_mode = #tpu.pipeline_mode<synchronous>, transform_indices = @transform_4, window_bounds = array<i64: 2, 10, 32>}, {pipeline_mode = #tpu.pipeline_mode<synchronous>, transform_indices = @transform_5, window_bounds = array<i64: 2, 32, 96>}, {pipeline_mode = #tpu.pipeline_mode<synchronous>, transform_indices = @transform_6, window_bounds = array<i64: 2, 1, 96>}, {pipeline_mode = #tpu.pipeline_mode<synchronous>, transform_indices = @transform_7, window_bounds = array<i64: 2, 32, 32>}, {pipeline_mode = #tpu.pipeline_mode<synchronous>, transform_indices = @transform_8, window_bounds = array<i64: 2, 32, 64>}, {pipeline_mode = #tpu.pipeline_mode<synchronous>, transform_indices = @transform_9, window_bounds = array<i64: 2, 1, 64>}, {pipeline_mode = #tpu.pipeline_mode<synchronous>, transform_indices = @transform_10, window_bounds = array<i64: 2, 64, 32>}, {pipeline_mode = #tpu.pipeline_mode<synchronous>, transform_indices = @transform_11, window_bounds = array<i64: 2, 32>}]} {
    %c0 = arith.constant 0 : index
    %c0_0 = arith.constant 0 : index
    %c0_1 = arith.constant 0 : index
    %0 = vector.load %arg1[%c0, %c0_0, %c0_1] : memref<2x8x32xf32, #tpu.memory_space<vmem>>, vector<2x8x32xf32>
    %1 = vector.shape_cast %0 : vector<2x8x32xf32> to vector<16x32xf32>
    %c0_2 = arith.constant 0 : index
    %c0_3 = arith.constant 0 : index
    %c0_4 = arith.constant 0 : index
    %2 = vector.load %arg2[%c0_2, %c0_3, %c0_4] : memref<2x1x8xf32, #tpu.memory_space<vmem>>, vector<2x1x8xf32>
    %3 = vector.shape_cast %2 : vector<2x1x8xf32> to vector<2x1x8xf32>
    %4 = vector.broadcast %3 : vector<2x1x8xf32> to vector<2x8x8xf32>
    %c0_5 = arith.constant 0 : index
    %c0_6 = arith.constant 0 : index
    %5 = vector.load %arg4[%c0_5, %c0_6] : memref<2x32xf32, #tpu.memory_space<vmem>>, vector<2x32xf32>
    %6 = vector.extract_strided_slice %5 {offsets = [0, 0], sizes = [1, 32], strides = [1, 1]} : vector<2x32xf32> to vector<1x32xf32>
    %7 = vector.extract_strided_slice %5 {offsets = [1, 0], sizes = [1, 32], strides = [1, 1]} : vector<2x32xf32> to vector<1x32xf32>
    %cst = arith.constant dense<0.000000e+00> : vector<16xf32>
    %8 = vector.multi_reduction <add>, %1, %cst [1] : vector<16x32xf32> to vector<16xf32>
    %9 = vector.shape_cast %8 : vector<16xf32> to vector<16x1xf32>
    %cst_7 = arith.constant 3.200000e+01 : f32
    %10 = vector.broadcast %cst_7 : f32 to vector<16x1xf32>
    %11 = arith.divf %9, %10 : vector<16x1xf32>
    %12 = vector.broadcast %11 : vector<16x1xf32> to vector<16x32xf32>
    %13 = arith.subf %1, %12 : vector<16x32xf32>
    %14 = arith.mulf %13, %13 : vector<16x32xf32>
    %cst_8 = arith.constant dense<0.000000e+00> : vector<16xf32>
    %15 = vector.multi_reduction <add>, %14, %cst_8 [1] : vector<16x32xf32> to vector<16xf32>
    %16 = vector.shape_cast %15 : vector<16xf32> to vector<16x1xf32>
    %cst_9 = arith.constant 3.200000e+01 : f32
    %17 = vector.broadcast %cst_9 : f32 to vector<16x1xf32>
    %18 = arith.divf %16, %17 : vector<16x1xf32>
    %19 = vector.broadcast %11 : vector<16x1xf32> to vector<16x32xf32>
    %20 = arith.subf %1, %19 : vector<16x32xf32>
    %cst_10 = arith.constant 9.99999996E-13 : f32
    %21 = vector.broadcast %cst_10 : f32 to vector<16x1xf32>
    %22 = arith.addf %18, %21 : vector<16x1xf32>
    %23 = math.rsqrt %22 : vector<16x1xf32>
    %24 = vector.broadcast %23 : vector<16x1xf32> to vector<16x32xf32>
    %25 = arith.mulf %20, %24 : vector<16x32xf32>
    %26 = vector.broadcast %6 : vector<1x32xf32> to vector<16x32xf32>
    %27 = arith.mulf %25, %26 : vector<16x32xf32>
    %28 = vector.broadcast %7 : vector<1x32xf32> to vector<16x32xf32>
    %29 = arith.addf %27, %28 : vector<16x32xf32>
    %c0_11 = arith.constant 0 : index
    %c0_12 = arith.constant 0 : index
    %c0_13 = arith.constant 0 : index
    %30 = vector.load %arg5[%c0_11, %c0_12, %c0_13] : memref<2x10x32xf32, #tpu.memory_space<vmem>>, vector<1x10x32xf32>
    %31 = vector.shape_cast %30 : vector<1x10x32xf32> to vector<10x32xf32>
    %32 = vector.extract_strided_slice %31 {offsets = [0, 0], sizes = [1, 32], strides = [1, 1]} : vector<10x32xf32> to vector<1x32xf32>
    %33 = vector.extract_strided_slice %31 {offsets = [1, 0], sizes = [1, 32], strides = [1, 1]} : vector<10x32xf32> to vector<1x32xf32>
    %cst_14 = arith.constant dense<0.000000e+00> : vector<16xf32>
    %34 = vector.multi_reduction <add>, %29, %cst_14 [1] : vector<16x32xf32> to vector<16xf32>
    %35 = vector.shape_cast %34 : vector<16xf32> to vector<16x1xf32>
    %cst_15 = arith.constant 3.200000e+01 : f32
    %36 = vector.broadcast %cst_15 : f32 to vector<16x1xf32>
    %37 = arith.divf %35, %36 : vector<16x1xf32>
    %38 = vector.broadcast %37 : vector<16x1xf32> to vector<16x32xf32>
    %39 = arith.subf %29, %38 : vector<16x32xf32>
    %40 = arith.mulf %39, %39 : vector<16x32xf32>
    %cst_16 = arith.constant dense<0.000000e+00> : vector<16xf32>
    %41 = vector.multi_reduction <add>, %40, %cst_16 [1] : vector<16x32xf32> to vector<16xf32>
    %42 = vector.shape_cast %41 : vector<16xf32> to vector<16x1xf32>
    %cst_17 = arith.constant 3.200000e+01 : f32
    %43 = vector.broadcast %cst_17 : f32 to vector<16x1xf32>
    %44 = arith.divf %42, %43 : vector<16x1xf32>
    %45 = vector.broadcast %37 : vector<16x1xf32> to vector<16x32xf32>
    %46 = arith.subf %29, %45 : vector<16x32xf32>
    %cst_18 = arith.constant 9.99999996E-13 : f32
    %47 = vector.broadcast %cst_18 : f32 to vector<16x1xf32>
    %48 = arith.addf %44, %47 : vector<16x1xf32>
    %49 = math.rsqrt %48 : vector<16x1xf32>
    %50 = vector.broadcast %49 : vector<16x1xf32> to vector<16x32xf32>
    %51 = arith.mulf %46, %50 : vector<16x32xf32>
    %52 = vector.broadcast %32 : vector<1x32xf32> to vector<16x32xf32>
    %53 = arith.mulf %51, %52 : vector<16x32xf32>
    %54 = vector.broadcast %33 : vector<1x32xf32> to vector<16x32xf32>
    %55 = arith.addf %53, %54 : vector<16x32xf32>
    %c0_19 = arith.constant 0 : index
    %c0_20 = arith.constant 0 : index
    %c0_21 = arith.constant 0 : index
    %56 = vector.load %arg6[%c0_19, %c0_20, %c0_21] : memref<2x32x96xf32, #tpu.memory_space<vmem>>, vector<1x32x96xf32>
    %57 = vector.shape_cast %56 : vector<1x32x96xf32> to vector<32x96xf32>
    %cst_22 = arith.constant dense<0.000000e+00> : vector<16x96xf32>
    %58 = tpu.matmul %55, %57, %cst_22 {dimension_numbers = #tpu.dot_dimension_numbers<[1], [0], [0], [1], [0, 0, 1, 1], [], []>} : vector<16x32xf32>, vector<32x96xf32>, vector<16x96xf32> -> vector<16x96xf32>
    %c0_23 = arith.constant 0 : index
    %c0_24 = arith.constant 0 : index
    %c0_25 = arith.constant 0 : index
    %59 = vector.load %arg7[%c0_23, %c0_24, %c0_25] : memref<2x1x96xf32, #tpu.memory_space<vmem>>, vector<1x1x96xf32>
    %60 = vector.shape_cast %59 : vector<1x1x96xf32> to vector<1x96xf32>
    %61 = vector.broadcast %60 : vector<1x96xf32> to vector<16x96xf32>
    %62 = arith.addf %58, %61 : vector<16x96xf32>
    %63 = vector.extract_strided_slice %62 {offsets = [0, 0], sizes = [16, 16], strides = [1, 1]} : vector<16x96xf32> to vector<16x16xf32>
    %64 = vector.shape_cast %63 : vector<16x16xf32> to vector<2x8x16xf32>
    %65 = vector.extract_strided_slice %62 {offsets = [0, 32], sizes = [16, 16], strides = [1, 1]} : vector<16x96xf32> to vector<16x16xf32>
    %66 = vector.shape_cast %65 : vector<16x16xf32> to vector<2x8x16xf32>
    %67 = vector.extract_strided_slice %62 {offsets = [0, 64], sizes = [16, 16], strides = [1, 1]} : vector<16x96xf32> to vector<16x16xf32>
    %68 = vector.shape_cast %67 : vector<16x16xf32> to vector<2x8x16xf32>
    "tpu.trace_start"() <{level = 10 : i32, message = "bqd,bkd->bqk"}> : () -> ()
    %cst_26 = arith.constant dense<0.000000e+00> : vector<2x8x8xf32>
    %69 = tpu.matmul %64, %66, %cst_26 {dimension_numbers = #tpu.dot_dimension_numbers<[2], [2], [1], [1], [0, 0, 0, 1, 1, 1], [0], [0]>} : vector<2x8x16xf32>, vector<2x8x16xf32>, vector<2x8x8xf32> -> vector<2x8x8xf32>
    "tpu.trace_stop"() : () -> ()
    %70 = arith.addf %69, %4 : vector<2x8x8xf32>
    %cst_27 = arith.constant dense<0xFF800000> : vector<2x8xf32>
    %71 = vector.multi_reduction <maximumf>, %70, %cst_27 [2] : vector<2x8x8xf32> to vector<2x8xf32>
    %72 = vector.shape_cast %71 : vector<2x8xf32> to vector<2x8x1xf32>
    %73 = vector.broadcast %72 : vector<2x8x1xf32> to vector<2x8x8xf32>
    %74 = arith.subf %70, %73 : vector<2x8x8xf32>
    %75 = math.exp %74 : vector<2x8x8xf32>
    %cst_28 = arith.constant dense<0.000000e+00> : vector<2x8xf32>
    %76 = vector.multi_reduction <add>, %75, %cst_28 [2] : vector<2x8x8xf32> to vector<2x8xf32>
    %77 = vector.shape_cast %76 : vector<2x8xf32> to vector<2x8x1xf32>
    %78 = tpu.reciprocal %77 {approx = true} : vector<2x8x1xf32> -> vector<2x8x1xf32>
    %79 = vector.broadcast %78 : vector<2x8x1xf32> to vector<2x8x8xf32>
    %80 = arith.mulf %75, %79 : vector<2x8x8xf32>
    "tpu.trace_start"() <{level = 10 : i32, message = "bqk,bkd->bqd"}> : () -> ()
    %cst_29 = arith.constant dense<0.000000e+00> : vector<2x8x16xf32>
    %81 = tpu.matmul %80, %68, %cst_29 {dimension_numbers = #tpu.dot_dimension_numbers<[2], [1], [1], [2], [0, 0, 0, 1, 1, 2], [0], [0]>} : vector<2x8x8xf32>, vector<2x8x16xf32>, vector<2x8x16xf32> -> vector<2x8x16xf32>
    "tpu.trace_stop"() : () -> ()
    %82 = vector.shape_cast %81 : vector<2x8x16xf32> to vector<16x16xf32>
    %83 = vector.extract_strided_slice %62 {offsets = [0, 16], sizes = [16, 16], strides = [1, 1]} : vector<16x96xf32> to vector<16x16xf32>
    %84 = vector.shape_cast %83 : vector<16x16xf32> to vector<2x8x16xf32>
    %85 = vector.extract_strided_slice %62 {offsets = [0, 48], sizes = [16, 16], strides = [1, 1]} : vector<16x96xf32> to vector<16x16xf32>
    %86 = vector.shape_cast %85 : vector<16x16xf32> to vector<2x8x16xf32>
    %87 = vector.extract_strided_slice %62 {offsets = [0, 80], sizes = [16, 16], strides = [1, 1]} : vector<16x96xf32> to vector<16x16xf32>
    %88 = vector.shape_cast %87 : vector<16x16xf32> to vector<2x8x16xf32>
    "tpu.trace_start"() <{level = 10 : i32, message = "bqd,bkd->bqk"}> : () -> ()
    %cst_30 = arith.constant dense<0.000000e+00> : vector<2x8x8xf32>
    %89 = tpu.matmul %84, %86, %cst_30 {dimension_numbers = #tpu.dot_dimension_numbers<[2], [2], [1], [1], [0, 0, 0, 1, 1, 1], [0], [0]>} : vector<2x8x16xf32>, vector<2x8x16xf32>, vector<2x8x8xf32> -> vector<2x8x8xf32>
    "tpu.trace_stop"() : () -> ()
    %90 = arith.addf %89, %4 : vector<2x8x8xf32>
    %cst_31 = arith.constant dense<0xFF800000> : vector<2x8xf32>
    %91 = vector.multi_reduction <maximumf>, %90, %cst_31 [2] : vector<2x8x8xf32> to vector<2x8xf32>
    %92 = vector.shape_cast %91 : vector<2x8xf32> to vector<2x8x1xf32>
    %93 = vector.broadcast %92 : vector<2x8x1xf32> to vector<2x8x8xf32>
    %94 = arith.subf %90, %93 : vector<2x8x8xf32>
    %95 = math.exp %94 : vector<2x8x8xf32>
    %cst_32 = arith.constant dense<0.000000e+00> : vector<2x8xf32>
    %96 = vector.multi_reduction <add>, %95, %cst_32 [2] : vector<2x8x8xf32> to vector<2x8xf32>
    %97 = vector.shape_cast %96 : vector<2x8xf32> to vector<2x8x1xf32>
    %98 = tpu.reciprocal %97 {approx = true} : vector<2x8x1xf32> -> vector<2x8x1xf32>
    %99 = vector.broadcast %98 : vector<2x8x1xf32> to vector<2x8x8xf32>
    %100 = arith.mulf %95, %99 : vector<2x8x8xf32>
    "tpu.trace_start"() <{level = 10 : i32, message = "bqk,bkd->bqd"}> : () -> ()
    %cst_33 = arith.constant dense<0.000000e+00> : vector<2x8x16xf32>
    %101 = tpu.matmul %100, %88, %cst_33 {dimension_numbers = #tpu.dot_dimension_numbers<[2], [1], [1], [2], [0, 0, 0, 1, 1, 2], [0], [0]>} : vector<2x8x8xf32>, vector<2x8x16xf32>, vector<2x8x16xf32> -> vector<2x8x16xf32>
    "tpu.trace_stop"() : () -> ()
    %102 = vector.shape_cast %101 : vector<2x8x16xf32> to vector<16x16xf32>
    %103 = tpu.concatenate %82, %102 in 1 : vector<16x16xf32>, vector<16x16xf32> -> vector<16x32xf32>
    %c0_34 = arith.constant 0 : index
    %c0_35 = arith.constant 0 : index
    %c0_36 = arith.constant 0 : index
    %104 = vector.load %arg8[%c0_34, %c0_35, %c0_36] : memref<2x32x32xf32, #tpu.memory_space<vmem>>, vector<1x32x32xf32>
    %105 = vector.shape_cast %104 : vector<1x32x32xf32> to vector<32x32xf32>
    %cst_37 = arith.constant dense<0.000000e+00> : vector<16x32xf32>
    %106 = tpu.matmul %103, %105, %cst_37 {dimension_numbers = #tpu.dot_dimension_numbers<[1], [0], [0], [1], [0, 0, 1, 1], [], []>} : vector<16x32xf32>, vector<32x32xf32>, vector<16x32xf32> -> vector<16x32xf32>
    %107 = vector.extract_strided_slice %31 {offsets = [8, 0], sizes = [1, 32], strides = [1, 1]} : vector<10x32xf32> to vector<1x32xf32>
    %108 = vector.broadcast %107 : vector<1x32xf32> to vector<16x32xf32>
    %109 = arith.addf %106, %108 : vector<16x32xf32>
    %110 = arith.addf %109, %55 : vector<16x32xf32>
    %111 = vector.extract_strided_slice %31 {offsets = [2, 0], sizes = [1, 32], strides = [1, 1]} : vector<10x32xf32> to vector<1x32xf32>
    %112 = vector.extract_strided_slice %31 {offsets = [3, 0], sizes = [1, 32], strides = [1, 1]} : vector<10x32xf32> to vector<1x32xf32>
    %cst_38 = arith.constant dense<0.000000e+00> : vector<16xf32>
    %113 = vector.multi_reduction <add>, %110, %cst_38 [1] : vector<16x32xf32> to vector<16xf32>
    %114 = vector.shape_cast %113 : vector<16xf32> to vector<16x1xf32>
    %cst_39 = arith.constant 3.200000e+01 : f32
    %115 = vector.broadcast %cst_39 : f32 to vector<16x1xf32>
    %116 = arith.divf %114, %115 : vector<16x1xf32>
    %117 = vector.broadcast %116 : vector<16x1xf32> to vector<16x32xf32>
    %118 = arith.subf %110, %117 : vector<16x32xf32>
    %119 = arith.mulf %118, %118 : vector<16x32xf32>
    %cst_40 = arith.constant dense<0.000000e+00> : vector<16xf32>
    %120 = vector.multi_reduction <add>, %119, %cst_40 [1] : vector<16x32xf32> to vector<16xf32>
    %121 = vector.shape_cast %120 : vector<16xf32> to vector<16x1xf32>
    %cst_41 = arith.constant 3.200000e+01 : f32
    %122 = vector.broadcast %cst_41 : f32 to vector<16x1xf32>
    %123 = arith.divf %121, %122 : vector<16x1xf32>
    %124 = vector.broadcast %116 : vector<16x1xf32> to vector<16x32xf32>
    %125 = arith.subf %110, %124 : vector<16x32xf32>
    %cst_42 = arith.constant 9.99999996E-13 : f32
    %126 = vector.broadcast %cst_42 : f32 to vector<16x1xf32>
    %127 = arith.addf %123, %126 : vector<16x1xf32>
    %128 = math.rsqrt %127 : vector<16x1xf32>
    %129 = vector.broadcast %128 : vector<16x1xf32> to vector<16x32xf32>
    %130 = arith.mulf %125, %129 : vector<16x32xf32>
    %131 = vector.broadcast %111 : vector<1x32xf32> to vector<16x32xf32>
    %132 = arith.mulf %130, %131 : vector<16x32xf32>
    %133 = vector.broadcast %112 : vector<1x32xf32> to vector<16x32xf32>
    %134 = arith.addf %132, %133 : vector<16x32xf32>
    %135 = arith.addf %134, %29 : vector<16x32xf32>
    %136 = vector.extract_strided_slice %31 {offsets = [4, 0], sizes = [1, 32], strides = [1, 1]} : vector<10x32xf32> to vector<1x32xf32>
    %137 = vector.extract_strided_slice %31 {offsets = [5, 0], sizes = [1, 32], strides = [1, 1]} : vector<10x32xf32> to vector<1x32xf32>
    %cst_43 = arith.constant dense<0.000000e+00> : vector<16xf32>
    %138 = vector.multi_reduction <add>, %135, %cst_43 [1] : vector<16x32xf32> to vector<16xf32>
    %139 = vector.shape_cast %138 : vector<16xf32> to vector<16x1xf32>
    %cst_44 = arith.constant 3.200000e+01 : f32
    %140 = vector.broadcast %cst_44 : f32 to vector<16x1xf32>
    %141 = arith.divf %139, %140 : vector<16x1xf32>
    %142 = vector.broadcast %141 : vector<16x1xf32> to vector<16x32xf32>
    %143 = arith.subf %135, %142 : vector<16x32xf32>
    %144 = arith.mulf %143, %143 : vector<16x32xf32>
    %cst_45 = arith.constant dense<0.000000e+00> : vector<16xf32>
    %145 = vector.multi_reduction <add>, %144, %cst_45 [1] : vector<16x32xf32> to vector<16xf32>
    %146 = vector.shape_cast %145 : vector<16xf32> to vector<16x1xf32>
    %cst_46 = arith.constant 3.200000e+01 : f32
    %147 = vector.broadcast %cst_46 : f32 to vector<16x1xf32>
    %148 = arith.divf %146, %147 : vector<16x1xf32>
    %149 = vector.broadcast %141 : vector<16x1xf32> to vector<16x32xf32>
    %150 = arith.subf %135, %149 : vector<16x32xf32>
    %cst_47 = arith.constant 9.99999996E-13 : f32
    %151 = vector.broadcast %cst_47 : f32 to vector<16x1xf32>
    %152 = arith.addf %148, %151 : vector<16x1xf32>
    %153 = math.rsqrt %152 : vector<16x1xf32>
    %154 = vector.broadcast %153 : vector<16x1xf32> to vector<16x32xf32>
    %155 = arith.mulf %150, %154 : vector<16x32xf32>
    %156 = vector.broadcast %136 : vector<1x32xf32> to vector<16x32xf32>
    %157 = arith.mulf %155, %156 : vector<16x32xf32>
    %158 = vector.broadcast %137 : vector<1x32xf32> to vector<16x32xf32>
    %159 = arith.addf %157, %158 : vector<16x32xf32>
    %c0_48 = arith.constant 0 : index
    %c0_49 = arith.constant 0 : index
    %c0_50 = arith.constant 0 : index
    %160 = vector.load %arg9[%c0_48, %c0_49, %c0_50] : memref<2x32x64xf32, #tpu.memory_space<vmem>>, vector<1x32x64xf32>
    %161 = vector.shape_cast %160 : vector<1x32x64xf32> to vector<32x64xf32>
    %cst_51 = arith.constant dense<0.000000e+00> : vector<16x64xf32>
    %162 = tpu.matmul %159, %161, %cst_51 {dimension_numbers = #tpu.dot_dimension_numbers<[1], [0], [0], [1], [0, 0, 1, 1], [], []>} : vector<16x32xf32>, vector<32x64xf32>, vector<16x64xf32> -> vector<16x64xf32>
    %c0_52 = arith.constant 0 : index
    %c0_53 = arith.constant 0 : index
    %c0_54 = arith.constant 0 : index
    %163 = vector.load %arg10[%c0_52, %c0_53, %c0_54] : memref<2x1x64xf32, #tpu.memory_space<vmem>>, vector<1x1x64xf32>
    %164 = vector.shape_cast %163 : vector<1x1x64xf32> to vector<1x64xf32>
    %165 = vector.broadcast %164 : vector<1x64xf32> to vector<16x64xf32>
    %166 = arith.addf %162, %165 : vector<16x64xf32>
    %167 = arith.mulf %166, %166 : vector<16x64xf32>
    %168 = arith.mulf %166, %167 : vector<16x64xf32>
    %cst_55 = arith.constant 4.471500e-02 : f32
    %169 = vector.broadcast %cst_55 : f32 to vector<16x64xf32>
    %170 = arith.mulf %169, %168 : vector<16x64xf32>
    %171 = arith.addf %166, %170 : vector<16x64xf32>
    %cst_56 = arith.constant 0.797884583 : f32
    %172 = vector.broadcast %cst_56 : f32 to vector<16x64xf32>
    %173 = arith.mulf %172, %171 : vector<16x64xf32>
    %174 = math.tanh %173 : vector<16x64xf32>
    %cst_57 = arith.constant 1.000000e+00 : f32
    %175 = vector.broadcast %cst_57 : f32 to vector<16x64xf32>
    %176 = arith.addf %175, %174 : vector<16x64xf32>
    %cst_58 = arith.constant 5.000000e-01 : f32
    %177 = vector.broadcast %cst_58 : f32 to vector<16x64xf32>
    %178 = arith.mulf %177, %176 : vector<16x64xf32>
    %179 = arith.mulf %166, %178 : vector<16x64xf32>
    %c0_59 = arith.constant 0 : index
    %c0_60 = arith.constant 0 : index
    %c0_61 = arith.constant 0 : index
    %180 = vector.load %arg11[%c0_59, %c0_60, %c0_61] : memref<2x64x32xf32, #tpu.memory_space<vmem>>, vector<1x64x32xf32>
    %181 = vector.shape_cast %180 : vector<1x64x32xf32> to vector<64x32xf32>
    %cst_62 = arith.constant dense<0.000000e+00> : vector<16x32xf32>
    %182 = tpu.matmul %179, %181, %cst_62 {dimension_numbers = #tpu.dot_dimension_numbers<[1], [0], [0], [1], [0, 0, 1, 1], [], []>} : vector<16x64xf32>, vector<64x32xf32>, vector<16x32xf32> -> vector<16x32xf32>
    %183 = vector.extract_strided_slice %31 {offsets = [9, 0], sizes = [1, 32], strides = [1, 1]} : vector<10x32xf32> to vector<1x32xf32>
    %184 = vector.broadcast %183 : vector<1x32xf32> to vector<16x32xf32>
    %185 = arith.addf %182, %184 : vector<16x32xf32>
    %186 = arith.addf %185, %159 : vector<16x32xf32>
    %187 = vector.extract_strided_slice %31 {offsets = [6, 0], sizes = [1, 32], strides = [1, 1]} : vector<10x32xf32> to vector<1x32xf32>
    %188 = vector.extract_strided_slice %31 {offsets = [7, 0], sizes = [1, 32], strides = [1, 1]} : vector<10x32xf32> to vector<1x32xf32>
    %cst_63 = arith.constant dense<0.000000e+00> : vector<16xf32>
    %189 = vector.multi_reduction <add>, %186, %cst_63 [1] : vector<16x32xf32> to vector<16xf32>
    %190 = vector.shape_cast %189 : vector<16xf32> to vector<16x1xf32>
    %cst_64 = arith.constant 3.200000e+01 : f32
    %191 = vector.broadcast %cst_64 : f32 to vector<16x1xf32>
    %192 = arith.divf %190, %191 : vector<16x1xf32>
    %193 = vector.broadcast %192 : vector<16x1xf32> to vector<16x32xf32>
    %194 = arith.subf %186, %193 : vector<16x32xf32>
    %195 = arith.mulf %194, %194 : vector<16x32xf32>
    %cst_65 = arith.constant dense<0.000000e+00> : vector<16xf32>
    %196 = vector.multi_reduction <add>, %195, %cst_65 [1] : vector<16x32xf32> to vector<16xf32>
    %197 = vector.shape_cast %196 : vector<16xf32> to vector<16x1xf32>
    %cst_66 = arith.constant 3.200000e+01 : f32
    %198 = vector.broadcast %cst_66 : f32 to vector<16x1xf32>
    %199 = arith.divf %197, %198 : vector<16x1xf32>
    %200 = vector.broadcast %192 : vector<16x1xf32> to vector<16x32xf32>
    %201 = arith.subf %186, %200 : vector<16x32xf32>
    %cst_67 = arith.constant 9.99999996E-13 : f32
    %202 = vector.broadcast %cst_67 : f32 to vector<16x1xf32>
    %203 = arith.addf %199, %202 : vector<16x1xf32>
    %204 = math.rsqrt %203 : vector<16x1xf32>
    %205 = vector.broadcast %204 : vector<16x1xf32> to vector<16x32xf32>
    %206 = arith.mulf %201, %205 : vector<16x32xf32>
    %207 = vector.broadcast %187 : vector<1x32xf32> to vector<16x32xf32>
    %208 = arith.mulf %206, %207 : vector<16x32xf32>
    %209 = vector.broadcast %188 : vector<1x32xf32> to vector<16x32xf32>
    %210 = arith.addf %208, %209 : vector<16x32xf32>
    %211 = arith.addf %210, %135 : vector<16x32xf32>
    %c1 = arith.constant 1 : index
    %c0_68 = arith.constant 0 : index
    %c0_69 = arith.constant 0 : index
    %212 = vector.load %arg5[%c1, %c0_68, %c0_69] : memref<2x10x32xf32, #tpu.memory_space<vmem>>, vector<1x10x32xf32>
    %213 = vector.shape_cast %212 : vector<1x10x32xf32> to vector<10x32xf32>
    %214 = vector.extract_strided_slice %213 {offsets = [0, 0], sizes = [1, 32], strides = [1, 1]} : vector<10x32xf32> to vector<1x32xf32>
    %215 = vector.extract_strided_slice %213 {offsets = [1, 0], sizes = [1, 32], strides = [1, 1]} : vector<10x32xf32> to vector<1x32xf32>
    %cst_70 = arith.constant dense<0.000000e+00> : vector<16xf32>
    %216 = vector.multi_reduction <add>, %211, %cst_70 [1] : vector<16x32xf32> to vector<16xf32>
    %217 = vector.shape_cast %216 : vector<16xf32> to vector<16x1xf32>
    %cst_71 = arith.constant 3.200000e+01 : f32
    %218 = vector.broadcast %cst_71 : f32 to vector<16x1xf32>
    %219 = arith.divf %217, %218 : vector<16x1xf32>
    %220 = vector.broadcast %219 : vector<16x1xf32> to vector<16x32xf32>
    %221 = arith.subf %211, %220 : vector<16x32xf32>
    %222 = arith.mulf %221, %221 : vector<16x32xf32>
    %cst_72 = arith.constant dense<0.000000e+00> : vector<16xf32>
    %223 = vector.multi_reduction <add>, %222, %cst_72 [1] : vector<16x32xf32> to vector<16xf32>
    %224 = vector.shape_cast %223 : vector<16xf32> to vector<16x1xf32>
    %cst_73 = arith.constant 3.200000e+01 : f32
    %225 = vector.broadcast %cst_73 : f32 to vector<16x1xf32>
    %226 = arith.divf %224, %225 : vector<16x1xf32>
    %227 = vector.broadcast %219 : vector<16x1xf32> to vector<16x32xf32>
    %228 = arith.subf %211, %227 : vector<16x32xf32>
    %cst_74 = arith.constant 9.99999996E-13 : f32
    %229 = vector.broadcast %cst_74 : f32 to vector<16x1xf32>
    %230 = arith.addf %226, %229 : vector<16x1xf32>
    %231 = math.rsqrt %230 : vector<16x1xf32>
    %232 = vector.broadcast %231 : vector<16x1xf32> to vector<16x32xf32>
    %233 = arith.mulf %228, %232 : vector<16x32xf32>
    %234 = vector.broadcast %214 : vector<1x32xf32> to vector<16x32xf32>
    %235 = arith.mulf %233, %234 : vector<16x32xf32>
    %236 = vector.broadcast %215 : vector<1x32xf32> to vector<16x32xf32>
    %237 = arith.addf %235, %236 : vector<16x32xf32>
    %c1_75 = arith.constant 1 : index
    %c0_76 = arith.constant 0 : index
    %c0_77 = arith.constant 0 : index
    %238 = vector.load %arg6[%c1_75, %c0_76, %c0_77] : memref<2x32x96xf32, #tpu.memory_space<vmem>>, vector<1x32x96xf32>
    %239 = vector.shape_cast %238 : vector<1x32x96xf32> to vector<32x96xf32>
    %cst_78 = arith.constant dense<0.000000e+00> : vector<16x96xf32>
    %240 = tpu.matmul %237, %239, %cst_78 {dimension_numbers = #tpu.dot_dimension_numbers<[1], [0], [0], [1], [0, 0, 1, 1], [], []>} : vector<16x32xf32>, vector<32x96xf32>, vector<16x96xf32> -> vector<16x96xf32>
    %c1_79 = arith.constant 1 : index
    %c0_80 = arith.constant 0 : index
    %c0_81 = arith.constant 0 : index
    %241 = vector.load %arg7[%c1_79, %c0_80, %c0_81] : memref<2x1x96xf32, #tpu.memory_space<vmem>>, vector<1x1x96xf32>
    %242 = vector.shape_cast %241 : vector<1x1x96xf32> to vector<1x96xf32>
    %243 = vector.broadcast %242 : vector<1x96xf32> to vector<16x96xf32>
    %244 = arith.addf %240, %243 : vector<16x96xf32>
    %245 = vector.extract_strided_slice %244 {offsets = [0, 0], sizes = [16, 16], strides = [1, 1]} : vector<16x96xf32> to vector<16x16xf32>
    %246 = vector.shape_cast %245 : vector<16x16xf32> to vector<2x8x16xf32>
    %247 = vector.extract_strided_slice %244 {offsets = [0, 32], sizes = [16, 16], strides = [1, 1]} : vector<16x96xf32> to vector<16x16xf32>
    %248 = vector.shape_cast %247 : vector<16x16xf32> to vector<2x8x16xf32>
    %249 = vector.extract_strided_slice %244 {offsets = [0, 64], sizes = [16, 16], strides = [1, 1]} : vector<16x96xf32> to vector<16x16xf32>
    %250 = vector.shape_cast %249 : vector<16x16xf32> to vector<2x8x16xf32>
    "tpu.trace_start"() <{level = 10 : i32, message = "bqd,bkd->bqk"}> : () -> ()
    %cst_82 = arith.constant dense<0.000000e+00> : vector<2x8x8xf32>
    %251 = tpu.matmul %246, %248, %cst_82 {dimension_numbers = #tpu.dot_dimension_numbers<[2], [2], [1], [1], [0, 0, 0, 1, 1, 1], [0], [0]>} : vector<2x8x16xf32>, vector<2x8x16xf32>, vector<2x8x8xf32> -> vector<2x8x8xf32>
    "tpu.trace_stop"() : () -> ()
    %252 = arith.addf %251, %4 : vector<2x8x8xf32>
    %cst_83 = arith.constant dense<0xFF800000> : vector<2x8xf32>
    %253 = vector.multi_reduction <maximumf>, %252, %cst_83 [2] : vector<2x8x8xf32> to vector<2x8xf32>
    %254 = vector.shape_cast %253 : vector<2x8xf32> to vector<2x8x1xf32>
    %255 = vector.broadcast %254 : vector<2x8x1xf32> to vector<2x8x8xf32>
    %256 = arith.subf %252, %255 : vector<2x8x8xf32>
    %257 = math.exp %256 : vector<2x8x8xf32>
    %cst_84 = arith.constant dense<0.000000e+00> : vector<2x8xf32>
    %258 = vector.multi_reduction <add>, %257, %cst_84 [2] : vector<2x8x8xf32> to vector<2x8xf32>
    %259 = vector.shape_cast %258 : vector<2x8xf32> to vector<2x8x1xf32>
    %260 = tpu.reciprocal %259 {approx = true} : vector<2x8x1xf32> -> vector<2x8x1xf32>
    %261 = vector.broadcast %260 : vector<2x8x1xf32> to vector<2x8x8xf32>
    %262 = arith.mulf %257, %261 : vector<2x8x8xf32>
    "tpu.trace_start"() <{level = 10 : i32, message = "bqk,bkd->bqd"}> : () -> ()
    %cst_85 = arith.constant dense<0.000000e+00> : vector<2x8x16xf32>
    %263 = tpu.matmul %262, %250, %cst_85 {dimension_numbers = #tpu.dot_dimension_numbers<[2], [1], [1], [2], [0, 0, 0, 1, 1, 2], [0], [0]>} : vector<2x8x8xf32>, vector<2x8x16xf32>, vector<2x8x16xf32> -> vector<2x8x16xf32>
    "tpu.trace_stop"() : () -> ()
    %264 = vector.shape_cast %263 : vector<2x8x16xf32> to vector<16x16xf32>
    %265 = vector.extract_strided_slice %244 {offsets = [0, 16], sizes = [16, 16], strides = [1, 1]} : vector<16x96xf32> to vector<16x16xf32>
    %266 = vector.shape_cast %265 : vector<16x16xf32> to vector<2x8x16xf32>
    %267 = vector.extract_strided_slice %244 {offsets = [0, 48], sizes = [16, 16], strides = [1, 1]} : vector<16x96xf32> to vector<16x16xf32>
    %268 = vector.shape_cast %267 : vector<16x16xf32> to vector<2x8x16xf32>
    %269 = vector.extract_strided_slice %244 {offsets = [0, 80], sizes = [16, 16], strides = [1, 1]} : vector<16x96xf32> to vector<16x16xf32>
    %270 = vector.shape_cast %269 : vector<16x16xf32> to vector<2x8x16xf32>
    "tpu.trace_start"() <{level = 10 : i32, message = "bqd,bkd->bqk"}> : () -> ()
    %cst_86 = arith.constant dense<0.000000e+00> : vector<2x8x8xf32>
    %271 = tpu.matmul %266, %268, %cst_86 {dimension_numbers = #tpu.dot_dimension_numbers<[2], [2], [1], [1], [0, 0, 0, 1, 1, 1], [0], [0]>} : vector<2x8x16xf32>, vector<2x8x16xf32>, vector<2x8x8xf32> -> vector<2x8x8xf32>
    "tpu.trace_stop"() : () -> ()
    %272 = arith.addf %271, %4 : vector<2x8x8xf32>
    %cst_87 = arith.constant dense<0xFF800000> : vector<2x8xf32>
    %273 = vector.multi_reduction <maximumf>, %272, %cst_87 [2] : vector<2x8x8xf32> to vector<2x8xf32>
    %274 = vector.shape_cast %273 : vector<2x8xf32> to vector<2x8x1xf32>
    %275 = vector.broadcast %274 : vector<2x8x1xf32> to vector<2x8x8xf32>
    %276 = arith.subf %272, %275 : vector<2x8x8xf32>
    %277 = math.exp %276 : vector<2x8x8xf32>
    %cst_88 = arith.constant dense<0.000000e+00> : vector<2x8xf32>
    %278 = vector.multi_reduction <add>, %277, %cst_88 [2] : vector<2x8x8xf32> to vector<2x8xf32>
    %279 = vector.shape_cast %278 : vector<2x8xf32> to vector<2x8x1xf32>
    %280 = tpu.reciprocal %279 {approx = true} : vector<2x8x1xf32> -> vector<2x8x1xf32>
    %281 = vector.broadcast %280 : vector<2x8x1xf32> to vector<2x8x8xf32>
    %282 = arith.mulf %277, %281 : vector<2x8x8xf32>
    "tpu.trace_start"() <{level = 10 : i32, message = "bqk,bkd->bqd"}> : () -> ()
    %cst_89 = arith.constant dense<0.000000e+00> : vector<2x8x16xf32>
    %283 = tpu.matmul %282, %270, %cst_89 {dimension_numbers = #tpu.dot_dimension_numbers<[2], [1], [1], [2], [0, 0, 0, 1, 1, 2], [0], [0]>} : vector<2x8x8xf32>, vector<2x8x16xf32>, vector<2x8x16xf32> -> vector<2x8x16xf32>
    "tpu.trace_stop"() : () -> ()
    %284 = vector.shape_cast %283 : vector<2x8x16xf32> to vector<16x16xf32>
    %285 = tpu.concatenate %264, %284 in 1 : vector<16x16xf32>, vector<16x16xf32> -> vector<16x32xf32>
    %c1_90 = arith.constant 1 : index
    %c0_91 = arith.constant 0 : index
    %c0_92 = arith.constant 0 : index
    %286 = vector.load %arg8[%c1_90, %c0_91, %c0_92] : memref<2x32x32xf32, #tpu.memory_space<vmem>>, vector<1x32x32xf32>
    %287 = vector.shape_cast %286 : vector<1x32x32xf32> to vector<32x32xf32>
    %cst_93 = arith.constant dense<0.000000e+00> : vector<16x32xf32>
    %288 = tpu.matmul %285, %287, %cst_93 {dimension_numbers = #tpu.dot_dimension_numbers<[1], [0], [0], [1], [0, 0, 1, 1], [], []>} : vector<16x32xf32>, vector<32x32xf32>, vector<16x32xf32> -> vector<16x32xf32>
    %289 = vector.extract_strided_slice %213 {offsets = [8, 0], sizes = [1, 32], strides = [1, 1]} : vector<10x32xf32> to vector<1x32xf32>
    %290 = vector.broadcast %289 : vector<1x32xf32> to vector<16x32xf32>
    %291 = arith.addf %288, %290 : vector<16x32xf32>
    %292 = arith.addf %291, %237 : vector<16x32xf32>
    %293 = vector.extract_strided_slice %213 {offsets = [2, 0], sizes = [1, 32], strides = [1, 1]} : vector<10x32xf32> to vector<1x32xf32>
    %294 = vector.extract_strided_slice %213 {offsets = [3, 0], sizes = [1, 32], strides = [1, 1]} : vector<10x32xf32> to vector<1x32xf32>
    %cst_94 = arith.constant dense<0.000000e+00> : vector<16xf32>
    %295 = vector.multi_reduction <add>, %292, %cst_94 [1] : vector<16x32xf32> to vector<16xf32>
    %296 = vector.shape_cast %295 : vector<16xf32> to vector<16x1xf32>
    %cst_95 = arith.constant 3.200000e+01 : f32
    %297 = vector.broadcast %cst_95 : f32 to vector<16x1xf32>
    %298 = arith.divf %296, %297 : vector<16x1xf32>
    %299 = vector.broadcast %298 : vector<16x1xf32> to vector<16x32xf32>
    %300 = arith.subf %292, %299 : vector<16x32xf32>
    %301 = arith.mulf %300, %300 : vector<16x32xf32>
    %cst_96 = arith.constant dense<0.000000e+00> : vector<16xf32>
    %302 = vector.multi_reduction <add>, %301, %cst_96 [1] : vector<16x32xf32> to vector<16xf32>
    %303 = vector.shape_cast %302 : vector<16xf32> to vector<16x1xf32>
    %cst_97 = arith.constant 3.200000e+01 : f32
    %304 = vector.broadcast %cst_97 : f32 to vector<16x1xf32>
    %305 = arith.divf %303, %304 : vector<16x1xf32>
    %306 = vector.broadcast %298 : vector<16x1xf32> to vector<16x32xf32>
    %307 = arith.subf %292, %306 : vector<16x32xf32>
    %cst_98 = arith.constant 9.99999996E-13 : f32
    %308 = vector.broadcast %cst_98 : f32 to vector<16x1xf32>
    %309 = arith.addf %305, %308 : vector<16x1xf32>
    %310 = math.rsqrt %309 : vector<16x1xf32>
    %311 = vector.broadcast %310 : vector<16x1xf32> to vector<16x32xf32>
    %312 = arith.mulf %307, %311 : vector<16x32xf32>
    %313 = vector.broadcast %293 : vector<1x32xf32> to vector<16x32xf32>
    %314 = arith.mulf %312, %313 : vector<16x32xf32>
    %315 = vector.broadcast %294 : vector<1x32xf32> to vector<16x32xf32>
    %316 = arith.addf %314, %315 : vector<16x32xf32>
    %317 = arith.addf %316, %211 : vector<16x32xf32>
    %318 = vector.extract_strided_slice %213 {offsets = [4, 0], sizes = [1, 32], strides = [1, 1]} : vector<10x32xf32> to vector<1x32xf32>
    %319 = vector.extract_strided_slice %213 {offsets = [5, 0], sizes = [1, 32], strides = [1, 1]} : vector<10x32xf32> to vector<1x32xf32>
    %cst_99 = arith.constant dense<0.000000e+00> : vector<16xf32>
    %320 = vector.multi_reduction <add>, %317, %cst_99 [1] : vector<16x32xf32> to vector<16xf32>
    %321 = vector.shape_cast %320 : vector<16xf32> to vector<16x1xf32>
    %cst_100 = arith.constant 3.200000e+01 : f32
    %322 = vector.broadcast %cst_100 : f32 to vector<16x1xf32>
    %323 = arith.divf %321, %322 : vector<16x1xf32>
    %324 = vector.broadcast %323 : vector<16x1xf32> to vector<16x32xf32>
    %325 = arith.subf %317, %324 : vector<16x32xf32>
    %326 = arith.mulf %325, %325 : vector<16x32xf32>
    %cst_101 = arith.constant dense<0.000000e+00> : vector<16xf32>
    %327 = vector.multi_reduction <add>, %326, %cst_101 [1] : vector<16x32xf32> to vector<16xf32>
    %328 = vector.shape_cast %327 : vector<16xf32> to vector<16x1xf32>
    %cst_102 = arith.constant 3.200000e+01 : f32
    %329 = vector.broadcast %cst_102 : f32 to vector<16x1xf32>
    %330 = arith.divf %328, %329 : vector<16x1xf32>
    %331 = vector.broadcast %323 : vector<16x1xf32> to vector<16x32xf32>
    %332 = arith.subf %317, %331 : vector<16x32xf32>
    %cst_103 = arith.constant 9.99999996E-13 : f32
    %333 = vector.broadcast %cst_103 : f32 to vector<16x1xf32>
    %334 = arith.addf %330, %333 : vector<16x1xf32>
    %335 = math.rsqrt %334 : vector<16x1xf32>
    %336 = vector.broadcast %335 : vector<16x1xf32> to vector<16x32xf32>
    %337 = arith.mulf %332, %336 : vector<16x32xf32>
    %338 = vector.broadcast %318 : vector<1x32xf32> to vector<16x32xf32>
    %339 = arith.mulf %337, %338 : vector<16x32xf32>
    %340 = vector.broadcast %319 : vector<1x32xf32> to vector<16x32xf32>
    %341 = arith.addf %339, %340 : vector<16x32xf32>
    %c1_104 = arith.constant 1 : index
    %c0_105 = arith.constant 0 : index
    %c0_106 = arith.constant 0 : index
    %342 = vector.load %arg9[%c1_104, %c0_105, %c0_106] : memref<2x32x64xf32, #tpu.memory_space<vmem>>, vector<1x32x64xf32>
    %343 = vector.shape_cast %342 : vector<1x32x64xf32> to vector<32x64xf32>
    %cst_107 = arith.constant dense<0.000000e+00> : vector<16x64xf32>
    %344 = tpu.matmul %341, %343, %cst_107 {dimension_numbers = #tpu.dot_dimension_numbers<[1], [0], [0], [1], [0, 0, 1, 1], [], []>} : vector<16x32xf32>, vector<32x64xf32>, vector<16x64xf32> -> vector<16x64xf32>
    %c1_108 = arith.constant 1 : index
    %c0_109 = arith.constant 0 : index
    %c0_110 = arith.constant 0 : index
    %345 = vector.load %arg10[%c1_108, %c0_109, %c0_110] : memref<2x1x64xf32, #tpu.memory_space<vmem>>, vector<1x1x64xf32>
    %346 = vector.shape_cast %345 : vector<1x1x64xf32> to vector<1x64xf32>
    %347 = vector.broadcast %346 : vector<1x64xf32> to vector<16x64xf32>
    %348 = arith.addf %344, %347 : vector<16x64xf32>
    %349 = arith.mulf %348, %348 : vector<16x64xf32>
    %350 = arith.mulf %348, %349 : vector<16x64xf32>
    %cst_111 = arith.constant 4.471500e-02 : f32
    %351 = vector.broadcast %cst_111 : f32 to vector<16x64xf32>
    %352 = arith.mulf %351, %350 : vector<16x64xf32>
    %353 = arith.addf %348, %352 : vector<16x64xf32>
    %cst_112 = arith.constant 0.797884583 : f32
    %354 = vector.broadcast %cst_112 : f32 to vector<16x64xf32>
    %355 = arith.mulf %354, %353 : vector<16x64xf32>
    %356 = math.tanh %355 : vector<16x64xf32>
    %cst_113 = arith.constant 1.000000e+00 : f32
    %357 = vector.broadcast %cst_113 : f32 to vector<16x64xf32>
    %358 = arith.addf %357, %356 : vector<16x64xf32>
    %cst_114 = arith.constant 5.000000e-01 : f32
    %359 = vector.broadcast %cst_114 : f32 to vector<16x64xf32>
    %360 = arith.mulf %359, %358 : vector<16x64xf32>
    %361 = arith.mulf %348, %360 : vector<16x64xf32>
    %c1_115 = arith.constant 1 : index
    %c0_116 = arith.constant 0 : index
    %c0_117 = arith.constant 0 : index
    %362 = vector.load %arg11[%c1_115, %c0_116, %c0_117] : memref<2x64x32xf32, #tpu.memory_space<vmem>>, vector<1x64x32xf32>
    %363 = vector.shape_cast %362 : vector<1x64x32xf32> to vector<64x32xf32>
    %cst_118 = arith.constant dense<0.000000e+00> : vector<16x32xf32>
    %364 = tpu.matmul %361, %363, %cst_118 {dimension_numbers = #tpu.dot_dimension_numbers<[1], [0], [0], [1], [0, 0, 1, 1], [], []>} : vector<16x64xf32>, vector<64x32xf32>, vector<16x32xf32> -> vector<16x32xf32>
    %365 = vector.extract_strided_slice %213 {offsets = [9, 0], sizes = [1, 32], strides = [1, 1]} : vector<10x32xf32> to vector<1x32xf32>
    %366 = vector.broadcast %365 : vector<1x32xf32> to vector<16x32xf32>
    %367 = arith.addf %364, %366 : vector<16x32xf32>
    %368 = arith.addf %367, %341 : vector<16x32xf32>
    %369 = vector.extract_strided_slice %213 {offsets = [6, 0], sizes = [1, 32], strides = [1, 1]} : vector<10x32xf32> to vector<1x32xf32>
    %370 = vector.extract_strided_slice %213 {offsets = [7, 0], sizes = [1, 32], strides = [1, 1]} : vector<10x32xf32> to vector<1x32xf32>
    %cst_119 = arith.constant dense<0.000000e+00> : vector<16xf32>
    %371 = vector.multi_reduction <add>, %368, %cst_119 [1] : vector<16x32xf32> to vector<16xf32>
    %372 = vector.shape_cast %371 : vector<16xf32> to vector<16x1xf32>
    %cst_120 = arith.constant 3.200000e+01 : f32
    %373 = vector.broadcast %cst_120 : f32 to vector<16x1xf32>
    %374 = arith.divf %372, %373 : vector<16x1xf32>
    %375 = vector.broadcast %374 : vector<16x1xf32> to vector<16x32xf32>
    %376 = arith.subf %368, %375 : vector<16x32xf32>
    %377 = arith.mulf %376, %376 : vector<16x32xf32>
    %cst_121 = arith.constant dense<0.000000e+00> : vector<16xf32>
    %378 = vector.multi_reduction <add>, %377, %cst_121 [1] : vector<16x32xf32> to vector<16xf32>
    %379 = vector.shape_cast %378 : vector<16xf32> to vector<16x1xf32>
    %cst_122 = arith.constant 3.200000e+01 : f32
    %380 = vector.broadcast %cst_122 : f32 to vector<16x1xf32>
    %381 = arith.divf %379, %380 : vector<16x1xf32>
    %382 = vector.broadcast %374 : vector<16x1xf32> to vector<16x32xf32>
    %383 = arith.subf %368, %382 : vector<16x32xf32>
    %cst_123 = arith.constant 9.99999996E-13 : f32
    %384 = vector.broadcast %cst_123 : f32 to vector<16x1xf32>
    %385 = arith.addf %381, %384 : vector<16x1xf32>
    %386 = math.rsqrt %385 : vector<16x1xf32>
    %387 = vector.broadcast %386 : vector<16x1xf32> to vector<16x32xf32>
    %388 = arith.mulf %383, %387 : vector<16x32xf32>
    %389 = vector.broadcast %369 : vector<1x32xf32> to vector<16x32xf32>
    %390 = arith.mulf %388, %389 : vector<16x32xf32>
    %391 = vector.broadcast %370 : vector<1x32xf32> to vector<16x32xf32>
    %392 = arith.addf %390, %391 : vector<16x32xf32>
    %393 = arith.addf %392, %317 : vector<16x32xf32>
    %394 = vector.shape_cast %393 : vector<16x32xf32> to vector<2x8x32xf32>
    %395 = tpu.iota {dimensions = array<i32: 1>} : vector<2x8x32xi32>
    %c0_124 = arith.constant 0 : index
    %c0_125 = arith.constant 0 : index
    %c0_126 = arith.constant 0 : index
    %396 = vector.load %arg3[%c0_124, %c0_125, %c0_126] : memref<2x1x1xi32, #tpu.memory_space<vmem>>, vector<2x1x1xi32>
    %397 = vector.broadcast %396 : vector<2x1x1xi32> to vector<2x8x32xi32>
    %398 = arith.cmpi eq, %395, %397 : vector<2x8x32xi32>
    %399 = arith.extui %398 : vector<2x8x32xi1> to vector<2x8x32xi32>
    %400 = arith.sitofp %399 : vector<2x8x32xi32> to vector<2x8x32xf32>
    %401 = arith.mulf %394, %400 : vector<2x8x32xf32>
    %cst_127 = arith.constant dense<0.000000e+00> : vector<2x32xf32>
    %402 = vector.multi_reduction <add>, %401, %cst_127 [1] : vector<2x8x32xf32> to vector<2x32xf32>
    %c0_128 = arith.constant 0 : index
    %c0_129 = arith.constant 0 : index
    %403 = vector.load %arg12[%c0_128, %c0_129] : memref<2x32xf32, #tpu.memory_space<vmem>>, vector<2x32xf32>
    tpu.vector_store %arg12[%c0_128, %c0_129], %402 {strides = array<i32>} : memref<2x32xf32, #tpu.memory_space<vmem>>, vector<2x32xf32>,
    return
  }
  func.func @transform_0(%arg0: i32) -> (i32, i32, i32) {
    %c0_i32 = arith.constant 0 : i32
    %c0_i32_0 = arith.constant 0 : i32
    %c0_i32_1 = arith.constant 0 : i32
    %c0_i32_2 = arith.constant 0 : i32
    return %c0_i32, %c0_i32_0, %c0_i32_1 : i32, i32, i32
  }
  func.func @transform_1(%arg0: i32) -> (i32, i32, i32) {
    %c0_i32 = arith.constant 0 : i32
    %c0_i32_0 = arith.constant 0 : i32
    %c0_i32_1 = arith.constant 0 : i32
    %c0_i32_2 = arith.constant 0 : i32
    return %c0_i32, %c0_i32_0, %c0_i32_1 : i32, i32, i32
  }
  func.func @transform_2(%arg0: i32) -> (i32, i32, i32) {
    %c0_i32 = arith.constant 0 : i32
    %c0_i32_0 = arith.constant 0 : i32
    %c0_i32_1 = arith.constant 0 : i32
    %c0_i32_2 = arith.constant 0 : i32
    return %c0_i32, %c0_i32_0, %c0_i32_1 : i32, i32, i32
  }
  func.func @transform_3(%arg0: i32) -> (i32, i32) {
    %c0_i32 = arith.constant 0 : i32
    %c0_i32_0 = arith.constant 0 : i32
    %c0_i32_1 = arith.constant 0 : i32
    return %c0_i32, %c0_i32_0 : i32, i32
  }
  func.func @transform_4(%arg0: i32) -> (i32, i32, i32) {
    %c0_i32 = arith.constant 0 : i32
    %c0_i32_0 = arith.constant 0 : i32
    %c0_i32_1 = arith.constant 0 : i32
    %c0_i32_2 = arith.constant 0 : i32
    return %c0_i32, %c0_i32_0, %c0_i32_1 : i32, i32, i32
  }
  func.func @transform_5(%arg0: i32) -> (i32, i32, i32) {
    %c0_i32 = arith.constant 0 : i32
    %c0_i32_0 = arith.constant 0 : i32
    %c0_i32_1 = arith.constant 0 : i32
    %c0_i32_2 = arith.constant 0 : i32
    return %c0_i32, %c0_i32_0, %c0_i32_1 : i32, i32, i32
  }
  func.func @transform_6(%arg0: i32) -> (i32, i32, i32) {
    %c0_i32 = arith.constant 0 : i32
    %c0_i32_0 = arith.constant 0 : i32
    %c0_i32_1 = arith.constant 0 : i32
    %c0_i32_2 = arith.constant 0 : i32
    return %c0_i32, %c0_i32_0, %c0_i32_1 : i32, i32, i32
  }
  func.func @transform_7(%arg0: i32) -> (i32, i32, i32) {
    %c0_i32 = arith.constant 0 : i32
    %c0_i32_0 = arith.constant 0 : i32
    %c0_i32_1 = arith.constant 0 : i32
    %c0_i32_2 = arith.constant 0 : i32
    return %c0_i32, %c0_i32_0, %c0_i32_1 : i32, i32, i32
  }
  func.func @transform_8(%arg0: i32) -> (i32, i32, i32) {
    %c0_i32 = arith.constant 0 : i32
    %c0_i32_0 = arith.constant 0 : i32
    %c0_i32_1 = arith.constant 0 : i32
    %c0_i32_2 = arith.constant 0 : i32
    return %c0_i32, %c0_i32_0, %c0_i32_1 : i32, i32, i32
  }
  func.func @transform_9(%arg0: i32) -> (i32, i32, i32) {
    %c0_i32 = arith.constant 0 : i32
    %c0_i32_0 = arith.constant 0 : i32
    %c0_i32_1 = arith.constant 0 : i32
    %c0_i32_2 = arith.constant 0 : i32
    return %c0_i32, %c0_i32_0, %c0_i32_1 : i32, i32, i32
  }
  func.func @transform_10(%arg0: i32) -> (i32, i32, i32) {
    %c0_i32 = arith.constant 0 : i32
    %c0_i32_0 = arith.constant 0 : i32
    %c0_i32_1 = arith.constant 0 : i32
    %c0_i32_2 = arith.constant 0 : i32
    return %c0_i32, %c0_i32_0, %c0_i32_1 : i32, i32, i32
  }
  func.func @transform_11(%arg0: i32) -> (i32, i32) {
    %c0_i32 = arith.constant 0 : i32
    %c0_i32_0 = arith.constant 0 : i32
    %c0_i32_1 = arith.constant 0 : i32
    return %c0_i32, %c0_i32_0 : i32, i32
  }
}

</mosaic_0001>

<bundles_post_ra>
// kernel: tpu_custom_call.1
= control target key start
LH: loop header
LB: loop body
LE: loop exit
PB: predicated region body
PF: predicated region fallthrough
CT: control target
= control target key end

     0   :  { %16 = vsyncpa [#allocation3], 0  ;;  %s3699_s0 = inlined_call_operand.hbm [shape: f32[2,8,32], index: 0, kind: input, shape index: {}]   ;;  %s3700_s1 = inlined_call_operand.vmem [shape: f32[2,1,8], index: 1, kind: input, shape index: {}]   ;;  %s3701_s2 = inlined_call_operand.vmem [shape: s32[2,1,1], index: 2, kind: input, shape index: {}]   ;;  %s3702_s3 = inlined_call_operand.vmem [shape: f32[2,32], index: 3, kind: input, shape index: {}]   ;;  %s3703_s4 = inlined_call_operand.vmem [shape: f32[2,10,32], index: 4, kind: input, shape index: {}]   ;;  %s3704_s5 = inlined_call_operand.vmem [shape: f32[2,32,96], index: 5, kind: input, shape index: {}]   ;;  %s3705_s6 = inlined_call_operand.vmem [shape: f32[2,1,96], index: 6, kind: input, shape index: {}]   ;;  %s3706_s7 = inlined_call_operand.vmem [shape: f32[2,32,32], index: 7, kind: input, shape index: {}]   ;;  %s3707_s8 = inlined_call_operand.vmem [shape: f32[2,32,64], index: 8, kind: input, shape index: {}]   ;;  %s3708_s9 = inlined_call_operand.vmem [shape: f32[2,1,64], index: 9, kind: input, shape index: {}]   ;;  %s3709_s10 = inlined_call_operand.vmem [shape: f32[2,64,32], index: 10, kind: input, shape index: {}]   ;;  %s3710_s11 = inlined_call_operand.hbm [shape: f32[2,32], index: 11, kind: output, shape index: {}]  }
   0x1   :  { %17 = vsyncpa [#allocation4], 0  ;;  %s3091_s17 = smov [#allocation2]  }
   0x2   :  { %s23_s18 = sshll.u32 %s3091_s17, 4  ;;  %s24_s18 = int_to_ptr.vmem [resolvable:$true] %s23_s18 }
   0x3   :  { %s3055_s19 = scalar_lea.vmem %s24_s18, 256  ;;  %p3060_p1 = scmp.lt.s32.totalorder %s24_s18, %s24_s18 }
   0x4   :  { %p3056_p0 = scmp.ne.s32.totalorder %s24_s18, %s3055_s19  ;;  %p3061_p2 = scmp.lt.s32.totalorder %s3055_s19, %s3055_s19 }
   0x6   :  { %p3062_p3 = por %p3061_p2, %p3060_p1 }
   0x8   :  { %p3063_p4 = pnand %p3062_p3, %p3056_p0 }
   0xa   :  { %3066 = shalt.err (!%p3063_p4)
}
   0xb   :  { %s3092_s20 = smov 128   ;;  %s3093_s21 = smov 8  }
   0xc   :  { %29 = dma.hbm_to_vmem [thread:$0]  %s3699_s0, 256, %s24_s18, [#allocation3], %s3092_s20, %s3092_s20, %s3093_s21  }
   0xd   :  { %3087 = dma.done.wait [#allocation3], 256  }
   0xe   :  { %3088 = vsyncadd [#allocation3], 4294967040  ;;  %vm70_vm0 = vcmask 261120   ;;  %v53_v0 = vld [vmem:[#allocation2] sm:$0xff]  ;;  %v54_v1 = vld [vmem:[#allocation2 + $0x8] sm:$0xff]  ;;  %v98_v19 = vlaneseq  ;;  %vm3095_vm1 = vmmov 0  }
   0xf   :  { %v71_v2 = vsel %vm70_vm0, %v53_v0, 0.0  ;;  %v74_v3 = vsel %vm70_vm0, %v54_v1, 0.0  ;;  %v69_v23 = vld [vmem:[%s3702_s3] sm:$0x3]  ;;  %v153_v47 = vld [vmem:[%s3704_s5 + $0x18] sm:$0xff]  ;;  %v152_v48 = vld [vmem:[%s3704_s5 + $0x10] sm:$0xff] }
  0x10   :  { %72 = vadd.xlane.f32.xlu0 %v71_v2  ;;  %v3171_v21 = vshrl.u32 %v98_v19, 7  ;;  %2772 = vmatprep.subr.mxu1 %v153_v47  ;;  %v151_v49 = vld [vmem:[%s3704_s5 + $0x8] sm:$0xff]  ;;  %v150_v50 = vld [vmem:[%s3704_s5] sm:$0xff]  ;;  %s3096_s17 = smov 96   ;;  %vm245_vm2 = vcmask 130048   ;;  %vm397_vm3 = vcmask 64512  }
  0x11   :  { %2773 = vmatpush3.msra.mxu1 %v153_v47  ;;  %v3211_v57 = vld [vmem:[%s3703_s4] sm:$0xff]  ;;  %s3097_s22 = smov 64   ;;  %s3098_s23 = smov 80   ;;  %vm1203_vm4 = vcmask 523264   ;;  %vm2590_vm7 = vcmask 1041409   ;;  %vm2593_vm8 = vcmask 254976  }
  0x12   :  { %v3174_v22 = vsub.s32 0, %v3171_v21  ;;  %v3180_v24 = vsub.s32 1, %v3171_v21  ;;  %2774 = vmatprep.subr.mxu1 %v152_v48  ;;  %s3100_s0 = smov 48   ;;  %s3101_s12 = smov 16  }
  0x13   :  { %2775 = vmatpush3.msra.mxu1 %v152_v48 }
  0x14   :  { %75 = vadd.xlane.f32.xlu0 %v74_v3  ;;  %v101_v25 = vrot.slane %v69_v23, %v3174_v22  ;;  %v107_v28 = vrot.slane %v69_v23, %v3180_v24  ;;  %2776 = vmatprep.subr.mxu1 %v151_v49  ;;  %v141_v58 = vrot.slane %v3211_v57, %v3174_v22 }
  0x15   :  { %2777 = vmatpush3.msra.mxu1 %v151_v49  ;;  %v147_v61 = vrot.slane %v3211_v57, %v3180_v24 }
  0x16   :  { %2778 = vmatprep.subr.mxu1 %v150_v50 }
  0x17   :  { %2779 = vmatpush3.msra.mxu1 %v150_v50 }
  0x99   :  { %v73_v4 = vpop.xlane.xlu0 %72 }
  0x9a   :  { %v78_v5 = vmul.f32 0.03125, %v73_v4  ;;  %v3094_v4 = vmov 0.0  }
  0x9b   :  { %2783 = vmatprep.subr.mxu1 %v3094_v4  ;;  %2793 = vmatprep.subr.mxu0 %v3094_v4 }
  0x9c   :  { %v80_v6 = vsub.f32 %v53_v0, %v78_v5  ;;  %2795 = vmatprep.mubr.msk.f32.mxu0 %vm3095_vm1, %v3094_v4  ;;  %v2612_v5 = vld [vmem:[%s3705_s6] ss:$0 sm:$0xff] }
  0x9d   :  { %v76_v7 = vpop.xlane.xlu0 %75 }
  0x9e   :  { %v79_v8 = vmul.f32 0.03125, %v76_v7  ;;  %v82_v9 = vmul.f32 %v80_v6, %v80_v6 }
  0xa0   :  { %v81_v10 = vsub.f32 %v54_v1, %v79_v8  ;;  %v84_v11 = vsel %vm70_vm0, %v82_v9, 0.0 }
  0xa1   :  { %85 = vadd.xlane.f32.xlu1 %v84_v11 }
  0xa2   :  { %v83_v12 = vmul.f32 %v81_v10, %v81_v10 }
  0xa4   :  { %v87_v13 = vsel %vm70_vm0, %v83_v12, 0.0  ;;  %v3257_v12 = vld [vmem:[%s3700_s1] ss:$0 sm:$0xff] }
  0xa5   :  { %88 = vadd.xlane.f32.xlu1 %v87_v13 }
 0x12a   :  { %v86_v14 = vpop.xlane.xlu1 %85 }
 0x12b   :  { %v90_v15 = vmul.f32 0.03125, %v86_v14 }
 0x12d   :  { %v92_v16 = vadd.f32 1e-12, %v90_v15 }
 0x12e   :  { %v89_v17 = vpop.xlane.xlu1 %88 }
 0x12f   :  { %2971 = vrsqrt.f32 %v92_v16  ;;  %v91_v18 = vmul.f32 0.03125, %v89_v17  ;;  %v3263_v16 = vld [vmem:[%s3700_s1 + $0x1] ss:$0 sm:$0xff]  ;;  %s3099_s1 = smov 112  }
 0x131   :  { %v93_v20 = vadd.f32 1e-12, %v91_v18 }
 0x133   :  { %2973 = vrsqrt.f32 %v93_v20 }
 0x13c   :  { %v2972_v26 = vpop.eup %2971 }
 0x13d   :  { %v96_v27 = vmul.f32 %v2972_v26, %v80_v6 }
 0x13f   :  { %v102_v29 = vmul.f32 %v101_v25, %v96_v27 }
 0x140   :  { %v2974_v30 = vpop.eup %2973 }
 0x141   :  { %v3184_v31 = vadd.f32 %v107_v28, %v102_v29  ;;  %v97_v32 = vmul.f32 %v2974_v30, %v81_v10 }
 0x143   :  { %v112_v33 = vsel %vm70_vm0, %v3184_v31, 0.0  ;;  %v103_v34 = vmul.f32 %v101_v25, %v97_v32 }
 0x144   :  { %113 = vadd.xlane.f32.xlu0 %v112_v33 }
 0x145   :  { %v3188_v35 = vadd.f32 %v107_v28, %v103_v34 }
 0x147   :  { %v115_v36 = vsel %vm70_vm0, %v3188_v35, 0.0 }
 0x148   :  { %116 = vadd.xlane.f32.xlu1 %v115_v36 }
 0x1cd   :  { %v114_v37 = vpop.xlane.xlu0 %113 }
 0x1ce   :  { %v118_v38 = vmul.f32 0.03125, %v114_v37 }
 0x1d0   :  { %v120_v39 = vsub.f32 %v3184_v31, %v118_v38 }
 0x1d1   :  { %v117_v40 = vpop.xlane.xlu1 %116 }
 0x1d2   :  { %v119_v41 = vmul.f32 0.03125, %v117_v40  ;;  %v122_v42 = vmul.f32 %v120_v39, %v120_v39 }
 0x1d4   :  { %v121_v43 = vsub.f32 %v3188_v35, %v119_v41  ;;  %v124_v44 = vsel %vm70_vm0, %v122_v42, 0.0 }
 0x1d5   :  { %125 = vadd.xlane.f32.xlu0 %v124_v44 }
 0x1d6   :  { %v123_v45 = vmul.f32 %v121_v43, %v121_v43 }
 0x1d8   :  { %v127_v46 = vsel %vm70_vm0, %v123_v45, 0.0 }
 0x1d9   :  { %128 = vadd.xlane.f32.xlu1 %v127_v46 }
 0x25e   :  { %v126_v51 = vpop.xlane.xlu0 %125 }
 0x25f   :  { %v130_v52 = vmul.f32 0.03125, %v126_v51 }
 0x261   :  { %v132_v53 = vadd.f32 1e-12, %v130_v52 }
 0x262   :  { %v129_v54 = vpop.xlane.xlu1 %128 }
 0x263   :  { %2975 = vrsqrt.f32 %v132_v53  ;;  %v131_v55 = vmul.f32 0.03125, %v129_v54 }
 0x265   :  { %v133_v56 = vadd.f32 1e-12, %v131_v55 }
 0x267   :  { %2977 = vrsqrt.f32 %v133_v56 }
 0x270   :  { %v2976_v59 = vpop.eup %2975 }
 0x271   :  { %v136_v60 = vmul.f32 %v2976_v59, %v120_v39 }
 0x273   :  { %v142_v62 = vmul.f32 %v141_v58, %v136_v60 }
 0x274   :  { %v2978_v63 = vpop.eup %2977 }
 0x275   :  { %v137_v0 = vmul.f32 %v2978_v63, %v121_v43  ;;  %v3217_v1 = vadd.f32 %v147_v61, %v142_v62 }
 0x277   :  { %v143_v2 = vmul.f32 %v141_v58, %v137_v0  ;;  %2780 = vmatprep.mubr.msk.f32.mxu1 %vm70_vm0, %v3217_v1 }
 0x279   :  { %v3221_v3 = vadd.f32 %v147_v61, %v143_v2 }
 0x27b   :  { %2781 = vmatmul.mubr.msk.f32.vlgmr.msra.gmra.mxu1 %vm70_vm0, %v3221_v3 }
 0x27c   :  { %2785 = vmatprep.mubr.msk.f32.mxu1 %vm3095_vm1, %v3094_v4 }
 0x33b   :  { %v2782_v6 = vpop.f32.mrf.mxu1 }
 0x33c   :  { %v3234_v7 = vadd.f32 %v2782_v6, %v2612_v5 }
 0x33d   :  { %v233_v8 = vpop.f32.mrf.mxu1 }
 0x33e   :  { %v3236_v9 = vadd.f32 %v2612_v5, %v233_v8  ;;  %321 = vrot.lane.b32.xlu1 %v3234_v7, %s3096_s17 }
 0x340   :  { %243 = vrot.lane.b32.xlu0 %v3236_v9, %s3096_s17 }
 0x3b0   :  { %v322_v11 = vpop.permute.xlu1 %321 }
 0x3b2   :  { %v244_v10 = vpop.permute.xlu0 %243 }
 0x3b3   :  { %2784 = vmatpush3.xpose.msk.msra.mxu1 %vm245_vm2, %v244_v10 }
 0x3b4   :  { %2788 = vmatprep.subr.mxu1 %v3094_v4 }
 0x3b6   :  { %2786 = vmatmul.mubr.msk.f32.vlgmr.msra.gmra.mxu1 %vm245_vm2, %v3236_v9 }
 0x3b7   :  { %2789 = vmatpush3.xpose.msk.msra.mxu1 %vm245_vm2, %v322_v11  ;;  %2790 = vmatprep.mubr.msk.f32.mxu1 %vm3095_vm1, %v3094_v4 }
 0x3b8   :  { %2798 = vmatprep.subr.mxu1 %v3094_v4 }
 0x3ba   :  { %2791 = vmatmul.mubr.msk.f32.vlgmr.msra.gmra.mxu1 %vm245_vm2, %v3234_v7 }
 0x3bb   :  { %2800 = vmatprep.mubr.msk.f32.mxu1 %vm3095_vm1, %v3094_v4 }
 0x476   :  { %v316_v13 = vpop.f32.mrf.mxu1 }
 0x477   :  { %v317_v14 = vadd.f32 %v3257_v12, %v316_v13 }
 0x478   :  { %v2787_v15 = vpop.f32.mrf.mxu1 }
 0x479   :  { %v398_v17 = vsel %vm397_vm3, %v317_v14, -inf }
 0x47a   :  { %399 = vmax.xlane.f32.xlu1 %v398_v17  ;;  %v393_v18 = vpop.f32.mrf.mxu1 }
 0x47b   :  { %v394_v19 = vadd.f32 %v3263_v16, %v393_v18 }
 0x47c   :  { %v2792_v20 = vpop.f32.mrf.mxu1 }
 0x47d   :  { %v401_v23 = vsel %vm397_vm3, %v394_v19, -inf }
 0x47e   :  { %402 = vmax.xlane.f32.xlu0 %v401_v23 }
 0x48b   :  { %496 = vrot.lane.b32.xlu1 %v3234_v7, %s3097_s22 }
 0x48f   :  { %574 = vrot.lane.b32.xlu1 %v3236_v9, %s3098_s23 }
 0x493   :  { %652 = vrot.lane.b32.xlu1 %v3234_v7, %s3098_s23 }
 0x503   :  { %v400_v25 = vpop.xlane.xlu1 %399 }
 0x504   :  { %v404_v26 = vsub.f32 %v317_v14, %v400_v25  ;;  %v915_v25 = vld [vmem:[%s3706_s7 + $0x18] sm:$0xff] }
 0x506   :  { %v406_v27 = vmul.f32 1.442695, %v404_v26  ;;  %v913_v26 = vld [vmem:[%s3706_s7 + $0x8] sm:$0xff] }
 0x507   :  { %v497_v28 = vpop.permute.xlu1 %496  ;;  %v403_v29 = vpop.xlane.xlu0 %402 }
 0x508   :  { %2979 = vpow2.f32 %v406_v27  ;;  %v405_v30 = vsub.f32 %v394_v19, %v403_v29  ;;  %2799 = vmatpush3.msra.mxu1 %v497_v28  ;;  %v912_v27 = vld [vmem:[%s3706_s7] sm:$0xff] }
 0x509   :  { %2808 = vmatprep.subr.mxu1 %v3094_v4 }
 0x50a   :  { %v408_v32 = vmul.f32 1.442695, %v405_v30 }
 0x50b   :  { %v575_v38 = vpop.permute.xlu1 %574 }
 0x50c   :  { %2981 = vpow2.f32 %v408_v32 }
 0x50f   :  { %v653_v39 = vpop.permute.xlu1 %652 }
 0x515   :  { %v2980_v33 = vpop.eup %2979 }
 0x516   :  { %v410_v34 = vsel %vm397_vm3, %v2980_v33, 0.0 }
 0x517   :  { %411 = vadd.xlane.f32.xlu0 %v410_v34 }
 0x519   :  { %v2982_v36 = vpop.eup %2981 }
 0x51a   :  { %v413_v37 = vsel %vm397_vm3, %v2982_v36, 0.0 }
 0x51b   :  { %414 = vadd.xlane.f32.xlu1 %v413_v37 }
 0x52c   :  { %650 = vrot.lane.b32.xlu1 %v3234_v7, %s3099_s1 }
 0x52d   :  { %420 = vrot.lane.b32.xlu0 %v3236_v9, %s3097_s22 }
 0x531   :  { %572 = vrot.lane.b32.xlu0 %v3236_v9, %s3099_s1 }
 0x5a0   :  { %v412_v40 = vpop.xlane.xlu0 %411 }
 0x5a1   :  { %2983 = vrcp.f32 %v412_v40 }
 0x5a4   :  { %v415_v41 = vpop.xlane.xlu1 %414  ;;  %v421_v42 = vpop.permute.xlu0 %420 }
 0x5a5   :  { %2985 = vrcp.f32 %v415_v41  ;;  %2794 = vmatpush3.msra.mxu0 %v421_v42 }
 0x5a6   :  { %2803 = vmatprep.subr.mxu0 %v3094_v4 }
 0x5a8   :  { %v573_v47 = vpop.permute.xlu0 %572  ;;  %v651_v48 = vpop.permute.xlu1 %650 }
 0x5ae   :  { %v2984_v43 = vpop.eup %2983 }
 0x5af   :  { %v418_v44 = vmul.f32 %v2984_v43, %v2980_v33 }
 0x5b1   :  { %2796 = vmatmul.mubr.msk.f32.vlgmr.msra.gmra.mxu0 %vm397_vm3, %v418_v44 }
 0x5b2   :  { %v2986_v45 = vpop.eup %2985  ;;  %2804 = vmatpush3.xpose.msk.msra.mxu0 %vm245_vm2, %v575_v38  ;;  %2805 = vmatprep.mubr.msk.f32.mxu0 %vm3095_vm1, %v3094_v4  ;;  %v3339_v38 = vld [vmem:[%s3703_s4 + $0x8] sm:$0x3] }
 0x5b3   :  { %v419_v46 = vmul.f32 %v2986_v45, %v2982_v36  ;;  %2813 = vmatprep.subr.mxu0 %v3094_v4 }
 0x5b5   :  { %2801 = vmatmul.mubr.msk.f32.vlgmr.msra.gmra.mxu1 %vm397_vm3, %v419_v46  ;;  %2806 = vmatmul.mubr.msk.f32.vlgmr.msra.gmra.mxu0 %vm245_vm2, %v573_v47 }
 0x5b6   :  { %2809 = vmatpush3.xpose.msk.msra.mxu1 %vm245_vm2, %v653_v39  ;;  %2810 = vmatprep.mubr.msk.f32.mxu1 %vm3095_vm1, %v3094_v4  ;;  %v919_v39 = vrot.slane %v3339_v38, %v3174_v22 }
 0x5b7   :  { %2818 = vmatprep.subr.mxu1 %v3094_v4  ;;  %2815 = vmatprep.mubr.msk.f32.mxu0 %vm3095_vm1, %v3094_v4 }
 0x5b9   :  { %2811 = vmatmul.mubr.msk.f32.vlgmr.msra.gmra.mxu1 %vm245_vm2, %v651_v48 }
 0x5ba   :  { %2820 = vmatprep.mubr.msk.f32.mxu1 %vm3095_vm1, %v3094_v4 }
 0x671   :  { %v3300_v49 = vpop.f32.mrf.mxu0 }
 0x673   :  { %v2797_v50 = vpop.f32.mrf.mxu0 }
 0x675   :  { %v3302_v51 = vpop.f32.mrf.mxu1  ;;  %v646_v52 = vpop.f32.mrf.mxu0 }
 0x676   :  { %v647_v53 = vadd.f32 %v3257_v12, %v646_v52 }
 0x677   :  { %v2802_v54 = vpop.f32.mrf.mxu1  ;;  %v2807_v55 = vpop.f32.mrf.mxu0 }
 0x678   :  { %v728_v56 = vsel %vm397_vm3, %v647_v53, -inf }
 0x679   :  { %729 = vmax.xlane.f32.xlu0 %v728_v56  ;;  %v724_v58 = vpop.f32.mrf.mxu1 }
 0x67a   :  { %v725_v59 = vadd.f32 %v3263_v16, %v724_v58 }
 0x67b   :  { %v2812_v60 = vpop.f32.mrf.mxu1 }
 0x67c   :  { %v731_v61 = vsel %vm397_vm3, %v725_v59, -inf }
 0x67d   :  { %732 = vmax.xlane.f32.xlu1 %v731_v61 }
 0x68e   :  { %826 = vrot.lane.b32.xlu1 %v3234_v7, %s3100_s0 }
 0x702   :  { %v730_v62 = vpop.xlane.xlu0 %729 }
 0x703   :  { %v734_v63 = vsub.f32 %v647_v53, %v730_v62 }
 0x705   :  { %v736_v0 = vmul.f32 1.442695, %v734_v63  ;;  %v1031_v63 = vsub.s32 2, %v3171_v21 }
 0x706   :  { %v733_v2 = vpop.xlane.xlu1 %732 }
 0x707   :  { %2987 = vpow2.f32 %v736_v0  ;;  %v735_v5 = vsub.f32 %v725_v59, %v733_v2  ;;  %v1037_v0 = vsub.s32 3, %v3171_v21  ;;  %v1032_v2 = vrot.slane %v3211_v57, %v1031_v63 }
 0x709   :  { %v738_v6 = vmul.f32 1.442695, %v735_v5 }
 0x70a   :  { %v827_v8 = vpop.permute.xlu1 %826 }
 0x70b   :  { %2989 = vpow2.f32 %v738_v6  ;;  %2819 = vmatpush3.msra.mxu1 %v827_v8  ;;  %v1038_v8 = vrot.slane %v3211_v57, %v1037_v0 }
 0x714   :  { %v2988_v10 = vpop.eup %2987 }
 0x715   :  { %v740_v11 = vsel %vm397_vm3, %v2988_v10, 0.0 }
 0x716   :  { %741 = vadd.xlane.f32.xlu0 %v740_v11 }
 0x718   :  { %v2990_v13 = vpop.eup %2989 }
 0x719   :  { %v743_v14 = vsel %vm397_vm3, %v2990_v13, 0.0 }
 0x71a   :  { %744 = vadd.xlane.f32.xlu0 %v743_v14 }
 0x730   :  { %750 = vrot.lane.b32.xlu0 %v3236_v9, %s3100_s0  ;;  %v914_v9 = vld [vmem:[%s3706_s7 + $0x10] sm:$0xff] }
 0x79f   :  { %v742_v7 = vpop.xlane.xlu0 %741 }
 0x7a0   :  { %2991 = vrcp.f32 %v742_v7 }
 0x7a3   :  { %v745_v15 = vpop.xlane.xlu0 %744 }
 0x7a4   :  { %2993 = vrcp.f32 %v745_v15 }
 0x7a7   :  { %v751_v17 = vpop.permute.xlu0 %750 }
 0x7a8   :  { %2814 = vmatpush3.msra.mxu0 %v751_v17 }
 0x7a9   :  { %2823 = vmatprep.subr.mxu0 %v915_v25 }
 0x7ad   :  { %v2992_v18 = vpop.eup %2991 }
 0x7ae   :  { %v748_v19 = vmul.f32 %v2992_v18, %v2988_v10 }
 0x7b0   :  { %2816 = vmatmul.mubr.msk.f32.vlgmr.msra.gmra.mxu0 %vm397_vm3, %v748_v19 }
 0x7b1   :  { %v2994_v20 = vpop.eup %2993  ;;  %2824 = vmatpush3.msra.mxu0 %v915_v25 }
 0x7b2   :  { %v749_v23 = vmul.f32 %v2994_v20, %v2990_v13  ;;  %2825 = vmatprep.subr.mxu0 %v914_v9 }
 0x7b3   :  { %2826 = vmatpush3.msra.mxu0 %v914_v9 }
 0x7b4   :  { %2821 = vmatmul.mubr.msk.f32.vlgmr.msra.gmra.mxu1 %vm397_vm3, %v749_v23  ;;  %2827 = vmatprep.subr.mxu0 %v913_v26 }
 0x7b5   :  { %2828 = vmatpush3.msra.mxu0 %v913_v26 }
 0x7b6   :  { %2829 = vmatprep.subr.mxu0 %v912_v27 }
 0x7b7   :  { %2830 = vmatpush3.msra.mxu0 %v912_v27 }
 0x870   :  { %v822_v28 = vpop.f32.mrf.mxu0 }
 0x871   :  { %904 = vrot.lane.b32.xlu1 %v822_v28, %s3101_s12 }
 0x872   :  { %v2817_v29 = vpop.f32.mrf.mxu0 }
 0x874   :  { %v898_v30 = vpop.f32.mrf.mxu1 }
 0x875   :  { %906 = vrot.lane.b32.xlu1 %v898_v30, %s3101_s12 }
 0x876   :  { %v2822_v32 = vpop.f32.mrf.mxu1 }
 0x877   :  { %v1084_v32 = vld [vmem:[%s3707_s8 + $0x18] sm:$0xff] }
 0x878   :  { %2834 = vmatprep.subr.mxu1 %v1084_v32 }
 0x879   :  { %2835 = vmatpush3.msra.mxu1 %v1084_v32 }
 0x8e3   :  { %v905_v33 = vpop.permute.xlu1 %904 }
 0x8e4   :  { %v910_v34 = vsel %vm245_vm2, %v3300_v49, %v905_v33  ;;  %v1083_v33 = vld [vmem:[%s3707_s8 + $0x10] sm:$0xff] }
 0x8e5   :  { %2831 = vmatprep.mubr.msk.f32.mxu0 %vm70_vm0, %v910_v34  ;;  %v1082_v34 = vld [vmem:[%s3707_s8 + $0x8] sm:$0xff]  ;;  %2836 = vmatprep.subr.mxu1 %v1083_v33 }
 0x8e6   :  { %2837 = vmatpush3.msra.mxu1 %v1083_v33  ;;  %v1202_v33 = vrot.slane %v3339_v38, %v3180_v24 }
 0x8e7   :  { %v907_v36 = vpop.permute.xlu1 %906  ;;  %2838 = vmatprep.subr.mxu1 %v1082_v34 }
 0x8e8   :  { %v911_v37 = vsel %vm245_vm2, %v3302_v51, %v907_v36  ;;  %2839 = vmatpush3.msra.mxu1 %v1082_v34  ;;  %v1081_v36 = vld [vmem:[%s3707_s8] sm:$0xff] }
 0x8e9   :  { %2832 = vmatmul.mubr.msk.f32.vlgmr.msra.gmra.mxu0 %vm70_vm0, %v911_v37  ;;  %2840 = vmatprep.subr.mxu1 %v1081_v36 }
 0x8ea   :  { %2841 = vmatpush3.msra.mxu1 %v1081_v36 }
 0x9a9   :  { %v2833_v40 = vpop.f32.mrf.mxu0 }
 0x9aa   :  { %v998_v41 = vadd.f32 %v2833_v40, %v919_v39 }
 0x9ab   :  { %v992_v42 = vpop.f32.mrf.mxu0 }
 0x9ac   :  { %v993_v43 = vadd.f32 %v992_v42, %v919_v39  ;;  %v1002_v44 = vadd.f32 %v998_v41, %v3221_v3 }
 0x9ae   :  { %v1006_v45 = vsel %vm70_vm0, %v1002_v44, 0.0  ;;  %v1001_v46 = vadd.f32 %v993_v43, %v3217_v1 }
 0x9af   :  { %1007 = vadd.xlane.f32.xlu1 %v1006_v45  ;;  %v1077_v45 = vsub.s32 5, %v3171_v21 }
 0x9b0   :  { %v1003_v47 = vsel %vm70_vm0, %v1001_v46, 0.0 }
 0x9b1   :  { %1004 = vadd.xlane.f32.xlu0 %v1003_v47 }
 0xa38   :  { %v1008_v48 = vpop.xlane.xlu1 %1007 }
 0xa39   :  { %v1010_v49 = vmul.f32 0.03125, %v1008_v48 }
 0xa3a   :  { %v1005_v50 = vpop.xlane.xlu0 %1004 }
 0xa3b   :  { %v1009_v51 = vmul.f32 0.03125, %v1005_v50  ;;  %v1012_v52 = vsub.f32 %v1002_v44, %v1010_v49  ;;  %v1071_v44 = vsub.s32 4, %v3171_v21  ;;  %v1078_v49 = vrot.slane %v3211_v57, %v1077_v45 }
 0xa3d   :  { %v1011_v53 = vsub.f32 %v1001_v46, %v1009_v51  ;;  %v1014_v56 = vmul.f32 %v1012_v52, %v1012_v52  ;;  %v1072_v46 = vrot.slane %v3211_v57, %v1071_v44 }
 0xa3f   :  { %v1013_v54 = vmul.f32 %v1011_v53, %v1011_v53  ;;  %v1018_v3 = vsel %vm70_vm0, %v1014_v56, 0.0  ;;  %v1198_v56 = vld [vmem:[%s3709_s10 + $0x38] sm:$0xff] }
 0xa40   :  { %2845 = vmatprep.subr.mxu0 %v1198_v56 }
 0xa41   :  { %v1015_v55 = vsel %vm70_vm0, %v1013_v54, 0.0  ;;  %2846 = vmatpush3.msra.mxu0 %v1198_v56 }
 0xa42   :  { %1016 = vadd.xlane.f32.xlu0 %v1015_v55 }
 0xa46   :  { %1019 = vadd.xlane.f32.xlu0 %v1018_v3  ;;  %v1197_v3 = vld [vmem:[%s3709_s10 + $0x30] sm:$0xff] }
 0xa47   :  { %2847 = vmatprep.subr.mxu0 %v1197_v3 }
 0xa48   :  { %2848 = vmatpush3.msra.mxu0 %v1197_v3 }
 0xacb   :  { %v1017_v58 = vpop.xlane.xlu0 %1016 }
 0xacc   :  { %v1021_v1 = vmul.f32 0.03125, %v1017_v58  ;;  %v1196_v58 = vld [vmem:[%s3709_s10 + $0x28] sm:$0xff] }
 0xacd   :  { %2849 = vmatprep.subr.mxu0 %v1196_v58 }
 0xace   :  { %v1023_v59 = vadd.f32 1e-12, %v1021_v1  ;;  %2850 = vmatpush3.msra.mxu0 %v1196_v58  ;;  %v1195_v1 = vld [vmem:[%s3709_s10 + $0x20] sm:$0xff] }
 0xacf   :  { %v1020_v60 = vpop.xlane.xlu0 %1019  ;;  %2851 = vmatprep.subr.mxu0 %v1195_v1 }
 0xad0   :  { %2995 = vrsqrt.f32 %v1023_v59  ;;  %v1022_v61 = vmul.f32 0.03125, %v1020_v60  ;;  %2852 = vmatpush3.msra.mxu0 %v1195_v1  ;;  %v1194_v59 = vld [vmem:[%s3709_s10 + $0x18] sm:$0xff]  ;;  %v1193_v60 = vld [vmem:[%s3709_s10 + $0x10] sm:$0xff] }
 0xad1   :  { %2853 = vmatprep.subr.mxu0 %v1194_v59 }
 0xad2   :  { %v1024_v62 = vadd.f32 1e-12, %v1022_v61  ;;  %2854 = vmatpush3.msra.mxu0 %v1194_v59  ;;  %v1192_v61 = vld [vmem:[%s3709_s10 + $0x8] sm:$0xff] }
 0xad3   :  { %2855 = vmatprep.subr.mxu0 %v1193_v60 }
 0xad4   :  { %2997 = vrsqrt.f32 %v1024_v62  ;;  %2856 = vmatpush3.msra.mxu0 %v1193_v60  ;;  %v1191_v62 = vld [vmem:[%s3709_s10] sm:$0xff]  ;;  %v1315_v60 = vsub.s32 6, %v3171_v21 }
 0xad5   :  { %2857 = vmatprep.subr.mxu0 %v1192_v61 }
 0xad6   :  { %2858 = vmatpush3.msra.mxu0 %v1192_v61  ;;  %v1321_v61 = vsub.s32 7, %v3171_v21 }
 0xad7   :  { %2859 = vmatprep.subr.mxu0 %v1191_v62 }
 0xad8   :  { %2860 = vmatpush3.msra.mxu0 %v1191_v62  ;;  %v1316_v62 = vrot.slane %v3211_v57, %v1315_v60 }
 0xad9   :  { %2885 = vmatprep.subr.mxu0 %v3094_v4 }
 0xadd   :  { %v2996_v5 = vpop.eup %2995 }
 0xade   :  { %v1027_v6 = vmul.f32 %v2996_v5, %v1011_v53 }
 0xae0   :  { %v1033_v10 = vmul.f32 %v1032_v2, %v1027_v6 }
 0xae1   :  { %v2998_v11 = vpop.eup %2997 }
 0xae2   :  { %v1039_v13 = vadd.f32 %v1038_v8, %v1033_v10  ;;  %v1028_v14 = vmul.f32 %v2998_v11, %v1012_v52 }
 0xae4   :  { %v3358_v7 = vadd.f32 %v1039_v13, %v3184_v31  ;;  %v1034_v15 = vmul.f32 %v1032_v2, %v1028_v14  ;;  %v2629_v2 = vld [vmem:[%s3708_s9] ss:$0 sm:$0xff] }
 0xae6   :  { %v1043_v17 = vsel %vm70_vm0, %v3358_v7, 0.0  ;;  %v1040_v18 = vadd.f32 %v1038_v8, %v1034_v15 }
 0xae7   :  { %1044 = vadd.xlane.f32.xlu0 %v1043_v17 }
 0xae8   :  { %v3363_v19 = vadd.f32 %v1040_v18, %v3188_v35 }
 0xaea   :  { %v1046_v20 = vsel %vm70_vm0, %v3363_v19, 0.0 }
 0xaeb   :  { %1047 = vadd.xlane.f32.xlu1 %v1046_v20 }
 0xb70   :  { %v1045_v23 = vpop.xlane.xlu0 %1044 }
 0xb71   :  { %v1049_v25 = vmul.f32 0.03125, %v1045_v23 }
 0xb73   :  { %v1051_v9 = vsub.f32 %v3358_v7, %v1049_v25 }
 0xb74   :  { %v1048_v26 = vpop.xlane.xlu1 %1047 }
 0xb75   :  { %v1050_v31 = vmul.f32 0.03125, %v1048_v26  ;;  %v1053_v27 = vmul.f32 %v1051_v9, %v1051_v9 }
 0xb77   :  { %v1052_v28 = vsub.f32 %v3363_v19, %v1050_v31  ;;  %v1055_v29 = vsel %vm70_vm0, %v1053_v27, 0.0 }
 0xb78   :  { %1056 = vadd.xlane.f32.xlu0 %v1055_v29 }
 0xb79   :  { %v1054_v30 = vmul.f32 %v1052_v28, %v1052_v28 }
 0xb7b   :  { %v1058_v35 = vsel %vm70_vm0, %v1054_v30, 0.0 }
 0xb7c   :  { %1059 = vadd.xlane.f32.xlu1 %v1058_v35 }
 0xc01   :  { %v1057_v37 = vpop.xlane.xlu0 %1056 }
 0xc02   :  { %v1061_v39 = vmul.f32 0.03125, %v1057_v37 }
 0xc04   :  { %v1063_v40 = vadd.f32 1e-12, %v1061_v39 }
 0xc05   :  { %v1060_v41 = vpop.xlane.xlu1 %1059 }
 0xc06   :  { %2999 = vrsqrt.f32 %v1063_v40  ;;  %v1062_v42 = vmul.f32 0.03125, %v1060_v41 }
 0xc08   :  { %v1064_v43 = vadd.f32 1e-12, %v1062_v42 }
 0xc0a   :  { %3001 = vrsqrt.f32 %v1064_v43 }
 0xc13   :  { %v3000_v47 = vpop.eup %2999 }
 0xc14   :  { %v1067_v48 = vmul.f32 %v3000_v47, %v1051_v9 }
 0xc16   :  { %v1073_v50 = vmul.f32 %v1072_v46, %v1067_v48 }
 0xc17   :  { %v3002_v51 = vpop.eup %3001 }
 0xc18   :  { %v1068_v52 = vmul.f32 %v3002_v51, %v1052_v28  ;;  %v3391_v53 = vadd.f32 %v1078_v49, %v1073_v50 }
 0xc1a   :  { %v1074_v54 = vmul.f32 %v1072_v46, %v1068_v52  ;;  %2842 = vmatprep.mubr.msk.f32.mxu1 %vm70_vm0, %v3391_v53 }
 0xc1c   :  { %v1080_v55 = vadd.f32 %v1078_v49, %v1074_v54 }
 0xc1e   :  { %2843 = vmatmul.mubr.msk.f32.vlgmr.msra.gmra.mxu1 %vm70_vm0, %v1080_v55 }
 0xcde   :  { %v2844_v5 = vpop.f32.mrf.mxu1 }
 0xcdf   :  { %v1170_v6 = vadd.f32 %v2844_v5, %v2629_v2 }
 0xce0   :  { %v1164_v8 = vpop.f32.mrf.mxu1 }
 0xce1   :  { %v1174_v10 = vmul.f32 %v1170_v6, %v1170_v6  ;;  %v1165_v11 = vadd.f32 %v2629_v2, %v1164_v8 }
 0xce3   :  { %v1176_v13 = vmul.f32 %v1174_v10, %v1170_v6  ;;  %v1173_v14 = vmul.f32 %v1165_v11, %v1165_v11 }
 0xce5   :  { %v1178_v15 = vmul.f32 0.044715, %v1176_v13  ;;  %v1175_v17 = vmul.f32 %v1173_v14, %v1165_v11 }
 0xce7   :  { %v1180_v18 = vadd.f32 %v1178_v15, %v1170_v6  ;;  %v1177_v20 = vmul.f32 0.044715, %v1175_v17 }
 0xce9   :  { %v1182_v23 = vmul.f32 0.7978846, %v1180_v18  ;;  %v1179_v25 = vadd.f32 %v1177_v20, %v1165_v11 }
 0xceb   :  { %3003 = vtanh.f32 %v1182_v23  ;;  %v1181_v9 = vmul.f32 0.7978846, %v1179_v25 }
 0xced   :  { %3005 = vtanh.f32 %v1181_v9 }
 0xcf8   :  { %v3004_v26 = vpop.eup %3003 }
 0xcf9   :  { %v1186_v31 = vadd.f32 1.0, %v3004_v26 }
 0xcfa   :  { %v3006_v27 = vpop.eup %3005 }
 0xcfb   :  { %v1185_v28 = vadd.f32 1.0, %v3006_v27  ;;  %v1188_v29 = vmul.f32 0.5, %v1186_v31 }
 0xcfd   :  { %v1187_v30 = vmul.f32 0.5, %v1185_v28  ;;  %v1190_v32 = vmul.f32 %v1188_v29, %v1170_v6  ;;  %v1322_v6 = vrot.slane %v3211_v57, %v1321_v61 }
 0xcff   :  { %v1189_v35 = vmul.f32 %v1187_v30, %v1165_v11  ;;  %v2639_v30 = vld [vmem:[%s3704_s5 + $0x38] sm:$0xff] }
 0xd00   :  { %2864 = vmatprep.subr.mxu1 %v2639_v30 }
 0xd01   :  { %2861 = vmatprep.mubr.msk.f32.mxu0 %vm1203_vm4, %v1189_v35  ;;  %v2638_v35 = vld [vmem:[%s3704_s5 + $0x30] sm:$0xff]  ;;  %2865 = vmatpush3.msra.mxu1 %v2639_v30 }
 0xd02   :  { %2862 = vmatmul.mubr.msk.f32.vlgmr.msra.gmra.mxu0 %vm1203_vm4, %v1190_v32  ;;  %v2637_v32 = vld [vmem:[%s3704_s5 + $0x28] sm:$0xff]  ;;  %2866 = vmatprep.subr.mxu1 %v2638_v35 }
 0xd03   :  { %2887 = vmatprep.mubr.msk.f32.mxu0 %vm3095_vm1, %v3094_v4  ;;  %2867 = vmatpush3.msra.mxu1 %v2638_v35 }
 0xd04   :  { %2868 = vmatprep.subr.mxu1 %v2637_v32 }
 0xd05   :  { %2869 = vmatpush3.msra.mxu1 %v2637_v32 }
 0xdc2   :  { %v2863_v34 = vpop.f32.mrf.mxu0 }
 0xdc3   :  { %v1282_v36 = vadd.f32 %v2863_v34, %v1202_v33 }
 0xdc4   :  { %v1276_v37 = vpop.f32.mrf.mxu0 }
 0xdc5   :  { %v1277_v39 = vadd.f32 %v1276_v37, %v1202_v33  ;;  %v1286_v40 = vadd.f32 %v1282_v36, %v1080_v55  ;;  %v2636_v33 = vld [vmem:[%s3704_s5 + $0x20] sm:$0xff] }
 0xdc6   :  { %2870 = vmatprep.subr.mxu1 %v2636_v33 }
 0xdc7   :  { %v1290_v41 = vsel %vm70_vm0, %v1286_v40, 0.0  ;;  %v1285_v42 = vadd.f32 %v1277_v39, %v3391_v53  ;;  %2871 = vmatpush3.msra.mxu1 %v2636_v33 }
 0xdc8   :  { %1291 = vadd.xlane.f32.xlu1 %v1290_v41  ;;  %2875 = vmatprep.subr.mxu1 %v3094_v4 }
 0xdc9   :  { %v1287_v43 = vsel %vm70_vm0, %v1285_v42, 0.0 }
 0xdca   :  { %1288 = vadd.xlane.f32.xlu0 %v1287_v43 }
 0xe51   :  { %v1292_v46 = vpop.xlane.xlu1 %1291 }
 0xe52   :  { %v1294_v47 = vmul.f32 0.03125, %v1292_v46 }
 0xe53   :  { %v1289_v48 = vpop.xlane.xlu0 %1288 }
 0xe54   :  { %v1296_v49 = vsub.f32 %v1286_v40, %v1294_v47  ;;  %v1293_v50 = vmul.f32 0.03125, %v1289_v48 }
 0xe56   :  { %v1295_v51 = vsub.f32 %v1285_v42, %v1293_v50  ;;  %v1298_v38 = vmul.f32 %v1296_v49, %v1296_v49  ;;  %v3473_v42 = vld [vmem:[%s3703_s4 + $0x10] sm:$0xff] }
 0xe57   :  { %v1359_v46 = vrot.slane %v3473_v42, %v3174_v22 }
 0xe58   :  { %v1302_v52 = vsel %vm70_vm0, %v1298_v38, 0.0  ;;  %v1297_v54 = vmul.f32 %v1295_v51, %v1295_v51 }
 0xe59   :  { %1303 = vadd.xlane.f32.xlu1 %v1302_v52 }
 0xe5a   :  { %v1299_v55 = vsel %vm70_vm0, %v1297_v54, 0.0 }
 0xe5b   :  { %1300 = vadd.xlane.f32.xlu0 %v1299_v55  ;;  %v2641_v55 = vld [vmem:[%s3705_s6 + $0x1] ss:$0 sm:$0xff] }
 0xee2   :  { %v1304_v56 = vpop.xlane.xlu1 %1303 }
 0xee3   :  { %v1306_v53 = vmul.f32 0.03125, %v1304_v56 }
 0xee4   :  { %v1301_v3 = vpop.xlane.xlu0 %1300 }
 0xee5   :  { %v1308_v58 = vadd.f32 1e-12, %v1306_v53  ;;  %v1305_v1 = vmul.f32 0.03125, %v1301_v3 }
 0xee7   :  { %3007 = vrsqrt.f32 %v1308_v58  ;;  %v1307_v59 = vadd.f32 1e-12, %v1305_v1 }
 0xee9   :  { %3009 = vrsqrt.f32 %v1307_v59 }
 0xef4   :  { %v3008_v2 = vpop.eup %3007 }
 0xef5   :  { %v1312_v5 = vmul.f32 %v3008_v2, %v1296_v49 }
 0xef6   :  { %v3010_v8 = vpop.eup %3009 }
 0xef7   :  { %v1318_v10 = vmul.f32 %v1316_v62, %v1312_v5  ;;  %v1311_v11 = vmul.f32 %v3010_v8, %v1295_v51  ;;  %v1365_v51 = vrot.slane %v3473_v42, %v3180_v24 }
 0xef9   :  { %v1324_v13 = vadd.f32 %v1322_v6, %v1318_v10  ;;  %v1317_v14 = vmul.f32 %v1316_v62, %v1311_v11 }
 0xefb   :  { %v3444_v15 = vadd.f32 %v1324_v13, %v3363_v19  ;;  %v1323_v17 = vadd.f32 %v1322_v6, %v1317_v14 }
 0xefd   :  { %v1333_v18 = vsel %vm70_vm0, %v3444_v15, 0.0  ;;  %v3449_v20 = vadd.f32 %v1323_v17, %v3358_v7 }
 0xefe   :  { %1334 = vadd.xlane.f32.xlu1 %v1333_v18 }
 0xeff   :  { %v1330_v23 = vsel %vm70_vm0, %v3449_v20, 0.0 }
 0xf00   :  { %1331 = vadd.xlane.f32.xlu0 %v1330_v23 }
 0xf87   :  { %v1335_v57 = vpop.xlane.xlu1 %1334 }
 0xf88   :  { %v1337_v25 = vmul.f32 0.03125, %v1335_v57 }
 0xf89   :  { %v1332_v9 = vpop.xlane.xlu0 %1331 }
 0xf8a   :  { %v1339_v26 = vsub.f32 %v3444_v15, %v1337_v25  ;;  %v1336_v31 = vmul.f32 0.03125, %v1332_v9 }
 0xf8c   :  { %v1338_v19 = vsub.f32 %v3449_v20, %v1336_v31  ;;  %v1341_v27 = vmul.f32 %v1339_v26, %v1339_v26 }
 0xf8e   :  { %v1345_v28 = vsel %vm70_vm0, %v1341_v27, 0.0  ;;  %v1340_v29 = vmul.f32 %v1338_v19, %v1338_v19 }
 0xf8f   :  { %1346 = vadd.xlane.f32.xlu1 %v1345_v28 }
 0xf90   :  { %v1342_v7 = vsel %vm70_vm0, %v1340_v29, 0.0 }
 0xf91   :  { %1343 = vadd.xlane.f32.xlu0 %v1342_v7 }
0x1018   :  { %v1347_v34 = vpop.xlane.xlu1 %1346 }
0x1019   :  { %v1349_v36 = vmul.f32 0.03125, %v1347_v34 }
0x101a   :  { %v1344_v37 = vpop.xlane.xlu0 %1343 }
0x101b   :  { %v1351_v39 = vadd.f32 1e-12, %v1349_v36  ;;  %v1348_v40 = vmul.f32 0.03125, %v1344_v37 }
0x101d   :  { %3011 = vrsqrt.f32 %v1351_v39  ;;  %v1350_v41 = vadd.f32 1e-12, %v1348_v40 }
0x101f   :  { %3013 = vrsqrt.f32 %v1350_v41 }
0x102a   :  { %v3012_v43 = vpop.eup %3011 }
0x102b   :  { %v1355_v47 = vmul.f32 %v3012_v43, %v1339_v26 }
0x102c   :  { %v3014_v48 = vpop.eup %3013 }
0x102d   :  { %v1354_v49 = vmul.f32 %v3014_v48, %v1338_v19  ;;  %v1361_v50 = vmul.f32 %v1359_v46, %v1355_v47 }
0x102f   :  { %v1360_v38 = vmul.f32 %v1359_v46, %v1354_v49  ;;  %v3481_v54 = vadd.f32 %v1365_v51, %v1361_v50 }
0x1031   :  { %v3479_v52 = vadd.f32 %v1365_v51, %v1360_v38 }
0x1033   :  { %2872 = vmatprep.mubr.msk.f32.mxu1 %vm70_vm0, %v3479_v52 }
0x1034   :  { %2873 = vmatmul.mubr.msk.f32.vlgmr.msra.gmra.mxu1 %vm70_vm0, %v3481_v54 }
0x1035   :  { %2877 = vmatprep.mubr.msk.f32.mxu1 %vm3095_vm1, %v3094_v4 }
0x10f4   :  { %v2874_v56 = vpop.f32.mrf.mxu1 }
0x10f5   :  { %v3492_v53 = vadd.f32 %v2874_v56, %v2641_v55 }
0x10f6   :  { %v1453_v3 = vpop.f32.mrf.mxu1 }
0x10f7   :  { %v3494_v58 = vadd.f32 %v2641_v55, %v1453_v3  ;;  %1540 = vrot.lane.b32.xlu1 %v3492_v53, %s3096_s17 }
0x10f9   :  { %1463 = vrot.lane.b32.xlu0 %v3494_v58, %s3096_s17 }
0x1169   :  { %v1541_v59 = vpop.permute.xlu1 %1540 }
0x116b   :  { %v1464_v1 = vpop.permute.xlu0 %1463 }
0x116c   :  { %2876 = vmatpush3.xpose.msk.msra.mxu1 %vm245_vm2, %v1464_v1 }
0x116d   :  { %2880 = vmatprep.subr.mxu1 %v3094_v4 }
0x116f   :  { %2878 = vmatmul.mubr.msk.f32.vlgmr.msra.gmra.mxu1 %vm245_vm2, %v3494_v58 }
0x1170   :  { %2881 = vmatpush3.xpose.msk.msra.mxu1 %vm245_vm2, %v1541_v59  ;;  %2882 = vmatprep.mubr.msk.f32.mxu1 %vm3095_vm1, %v3094_v4 }
0x1171   :  { %2890 = vmatprep.subr.mxu1 %v3094_v4 }
0x1173   :  { %2883 = vmatmul.mubr.msk.f32.vlgmr.msra.gmra.mxu1 %vm245_vm2, %v3492_v53 }
0x1174   :  { %2892 = vmatprep.mubr.msk.f32.mxu1 %vm3095_vm1, %v3094_v4 }
0x122f   :  { %v1535_v62 = vpop.f32.mrf.mxu1 }
0x1230   :  { %v1536_v2 = vadd.f32 %v3257_v12, %v1535_v62 }
0x1231   :  { %v2879_v5 = vpop.f32.mrf.mxu1 }
0x1232   :  { %v1616_v6 = vsel %vm397_vm3, %v1536_v2, -inf }
0x1233   :  { %1617 = vmax.xlane.f32.xlu1 %v1616_v6  ;;  %v1612_v8 = vpop.f32.mrf.mxu1 }
0x1234   :  { %v1613_v10 = vadd.f32 %v3263_v16, %v1612_v8 }
0x1235   :  { %v2884_v11 = vpop.f32.mrf.mxu1 }
0x1236   :  { %v1619_v13 = vsel %vm397_vm3, %v1613_v10, -inf }
0x1237   :  { %1620 = vmax.xlane.f32.xlu0 %v1619_v13 }
0x1244   :  { %1714 = vrot.lane.b32.xlu1 %v3492_v53, %s3097_s22 }
0x1248   :  { %1792 = vrot.lane.b32.xlu1 %v3494_v58, %s3098_s23 }
0x124c   :  { %1870 = vrot.lane.b32.xlu1 %v3492_v53, %s3098_s23 }
0x12bc   :  { %v1618_v14 = vpop.xlane.xlu1 %1617 }
0x12bd   :  { %v1622_v17 = vsub.f32 %v1536_v2, %v1618_v14 }
0x12bf   :  { %v1624_v18 = vmul.f32 1.442695, %v1622_v17 }
0x12c0   :  { %v1715_v23 = vpop.permute.xlu1 %1714  ;;  %v1621_v57 = vpop.xlane.xlu0 %1620 }
0x12c1   :  { %3015 = vpow2.f32 %v1624_v18  ;;  %v1623_v25 = vsub.f32 %v1613_v10, %v1621_v57  ;;  %2891 = vmatpush3.msra.mxu1 %v1715_v23  ;;  %v2659_v57 = vld [vmem:[%s3706_s7 + $0x38] sm:$0xff] }
0x12c2   :  { %2900 = vmatprep.subr.mxu1 %v3094_v4 }
0x12c3   :  { %v1626_v9 = vmul.f32 1.442695, %v1623_v25  ;;  %v2657_v25 = vld [vmem:[%s3706_s7 + $0x28] sm:$0xff] }
0x12c4   :  { %v1793_v28 = vpop.permute.xlu1 %1792 }
0x12c5   :  { %3017 = vpow2.f32 %v1626_v9  ;;  %v2656_v9 = vld [vmem:[%s3706_s7 + $0x20] sm:$0xff] }
0x12c8   :  { %v1871_v29 = vpop.permute.xlu1 %1870 }
0x12ce   :  { %v3016_v26 = vpop.eup %3015 }
0x12cf   :  { %v1628_v31 = vsel %vm397_vm3, %v3016_v26, 0.0 }
0x12d0   :  { %1629 = vadd.xlane.f32.xlu0 %v1628_v31 }
0x12d2   :  { %v3018_v19 = vpop.eup %3017 }
0x12d3   :  { %v1631_v27 = vsel %vm397_vm3, %v3018_v19, 0.0 }
0x12d4   :  { %1632 = vadd.xlane.f32.xlu1 %v1631_v27 }
0x12e5   :  { %1868 = vrot.lane.b32.xlu1 %v3492_v53, %s3099_s1 }
0x12e6   :  { %1638 = vrot.lane.b32.xlu0 %v3494_v58, %s3097_s22 }
0x12ea   :  { %1790 = vrot.lane.b32.xlu0 %v3494_v58, %s3099_s1 }
0x1359   :  { %v1630_v7 = vpop.xlane.xlu0 %1629 }
0x135a   :  { %3019 = vrcp.f32 %v1630_v7 }
0x135d   :  { %v1633_v30 = vpop.xlane.xlu1 %1632  ;;  %v1639_v35 = vpop.permute.xlu0 %1638 }
0x135e   :  { %3021 = vrcp.f32 %v1633_v30  ;;  %2886 = vmatpush3.msra.mxu0 %v1639_v35  ;;  %v3587_v35 = vld [vmem:[%s3703_s4 + $0x18] sm:$0x3] }
0x135f   :  { %2895 = vmatprep.subr.mxu0 %v3094_v4 }
0x1361   :  { %v1791_v37 = vpop.permute.xlu0 %1790  ;;  %v1869_v39 = vpop.permute.xlu1 %1868 }
0x1367   :  { %v3020_v32 = vpop.eup %3019 }
0x1368   :  { %v1636_v33 = vmul.f32 %v3020_v32, %v3016_v26  ;;  %v2138_v32 = vrot.slane %v3587_v35, %v3174_v22 }
0x136a   :  { %2888 = vmatmul.mubr.msk.f32.vlgmr.msra.gmra.mxu0 %vm397_vm3, %v1636_v33 }
0x136b   :  { %v3022_v34 = vpop.eup %3021  ;;  %2896 = vmatpush3.xpose.msk.msra.mxu0 %vm245_vm2, %v1793_v28  ;;  %2897 = vmatprep.mubr.msk.f32.mxu0 %vm3095_vm1, %v3094_v4 }
0x136c   :  { %v1637_v36 = vmul.f32 %v3022_v34, %v3018_v19  ;;  %2905 = vmatprep.subr.mxu0 %v3094_v4 }
0x136e   :  { %2893 = vmatmul.mubr.msk.f32.vlgmr.msra.gmra.mxu1 %vm397_vm3, %v1637_v36  ;;  %2898 = vmatmul.mubr.msk.f32.vlgmr.msra.gmra.mxu0 %vm245_vm2, %v1791_v37 }
0x136f   :  { %2901 = vmatpush3.xpose.msk.msra.mxu1 %vm245_vm2, %v1871_v29  ;;  %2902 = vmatprep.mubr.msk.f32.mxu1 %vm3095_vm1, %v3094_v4 }
0x1370   :  { %2910 = vmatprep.subr.mxu1 %v3094_v4  ;;  %2907 = vmatprep.mubr.msk.f32.mxu0 %vm3095_vm1, %v3094_v4 }
0x1372   :  { %2903 = vmatmul.mubr.msk.f32.vlgmr.msra.gmra.mxu1 %vm245_vm2, %v1869_v39 }
0x1373   :  { %2912 = vmatprep.mubr.msk.f32.mxu1 %vm3095_vm1, %v3094_v4 }
0x142a   :  { %v3548_v40 = vpop.f32.mrf.mxu0 }
0x142c   :  { %v2889_v41 = vpop.f32.mrf.mxu0 }
0x142e   :  { %v3550_v43 = vpop.f32.mrf.mxu1  ;;  %v1864_v46 = vpop.f32.mrf.mxu0 }
0x142f   :  { %v1865_v47 = vadd.f32 %v3257_v12, %v1864_v46 }
0x1430   :  { %v2894_v48 = vpop.f32.mrf.mxu1  ;;  %v2899_v49 = vpop.f32.mrf.mxu0 }
0x1431   :  { %v1946_v50 = vsel %vm397_vm3, %v1865_v47, -inf }
0x1432   :  { %1947 = vmax.xlane.f32.xlu0 %v1946_v50  ;;  %v1942_v51 = vpop.f32.mrf.mxu1 }
0x1433   :  { %v1943_v38 = vadd.f32 %v3263_v16, %v1942_v51 }
0x1434   :  { %v2904_v55 = vpop.f32.mrf.mxu1 }
0x1435   :  { %v1949_v56 = vsel %vm397_vm3, %v1943_v38, -inf }
0x1436   :  { %1950 = vmax.xlane.f32.xlu1 %v1949_v56 }
0x1447   :  { %2044 = vrot.lane.b32.xlu1 %v3492_v53, %s3100_s0 }
0x14bb   :  { %v1948_v3 = vpop.xlane.xlu0 %1947 }
0x14bc   :  { %v1952_v1 = vsub.f32 %v1865_v47, %v1948_v3 }
0x14be   :  { %v1954_v59 = vmul.f32 1.442695, %v1952_v1 }
0x14bf   :  { %v1951_v62 = vpop.xlane.xlu1 %1950 }
0x14c0   :  { %3023 = vpow2.f32 %v1954_v59  ;;  %v1953_v12 = vsub.f32 %v1943_v38, %v1951_v62 }
0x14c2   :  { %v1956_v2 = vmul.f32 1.442695, %v1953_v12  ;;  %v2251_v12 = vrot.slane %v3473_v42, %v1031_v63 }
0x14c3   :  { %v2045_v5 = vpop.permute.xlu1 %2044 }
0x14c4   :  { %3025 = vpow2.f32 %v1956_v2  ;;  %2911 = vmatpush3.msra.mxu1 %v2045_v5 }
0x14cd   :  { %v3024_v6 = vpop.eup %3023 }
0x14ce   :  { %v1958_v16 = vsel %vm397_vm3, %v3024_v6, 0.0 }
0x14cf   :  { %1959 = vadd.xlane.f32.xlu0 %v1958_v16 }
0x14d1   :  { %v3026_v8 = vpop.eup %3025 }
0x14d2   :  { %v1961_v10 = vsel %vm397_vm3, %v3026_v8, 0.0 }
0x14d3   :  { %1962 = vadd.xlane.f32.xlu0 %v1961_v10 }
0x14e9   :  { %1968 = vrot.lane.b32.xlu0 %v3494_v58, %s3100_s0  ;;  %v2658_v58 = vld [vmem:[%s3706_s7 + $0x30] sm:$0xff] }
0x1558   :  { %v1960_v53 = vpop.xlane.xlu0 %1959 }
0x1559   :  { %3027 = vrcp.f32 %v1960_v53 }
0x155c   :  { %v1963_v11 = vpop.xlane.xlu0 %1962 }
0x155d   :  { %3029 = vrcp.f32 %v1963_v11 }
0x1560   :  { %v1969_v13 = vpop.permute.xlu0 %1968 }
0x1561   :  { %2906 = vmatpush3.msra.mxu0 %v1969_v13 }
0x1562   :  { %2915 = vmatprep.subr.mxu0 %v2659_v57 }
0x1566   :  { %v3028_v14 = vpop.eup %3027 }
0x1567   :  { %v1966_v17 = vmul.f32 %v3028_v14, %v3024_v6  ;;  %v2257_v6 = vrot.slane %v3473_v42, %v1037_v0 }
0x1569   :  { %2908 = vmatmul.mubr.msk.f32.vlgmr.msra.gmra.mxu0 %vm397_vm3, %v1966_v17 }
0x156a   :  { %v3030_v18 = vpop.eup %3029  ;;  %2916 = vmatpush3.msra.mxu0 %v2659_v57 }
0x156b   :  { %v1967_v23 = vmul.f32 %v3030_v18, %v3026_v8  ;;  %2917 = vmatprep.subr.mxu0 %v2658_v58 }
0x156c   :  { %2918 = vmatpush3.msra.mxu0 %v2658_v58 }
0x156d   :  { %2913 = vmatmul.mubr.msk.f32.vlgmr.msra.gmra.mxu1 %vm397_vm3, %v1967_v23  ;;  %2919 = vmatprep.subr.mxu0 %v2657_v25 }
0x156e   :  { %2920 = vmatpush3.msra.mxu0 %v2657_v25 }
0x156f   :  { %2921 = vmatprep.subr.mxu0 %v2656_v9 }
0x1570   :  { %2922 = vmatpush3.msra.mxu0 %v2656_v9 }
0x1629   :  { %v2040_v26 = vpop.f32.mrf.mxu0 }
0x162a   :  { %2122 = vrot.lane.b32.xlu1 %v2040_v26, %s3101_s12 }
0x162b   :  { %v2909_v31 = vpop.f32.mrf.mxu0 }
0x162d   :  { %v2116_v19 = vpop.f32.mrf.mxu1 }
0x162e   :  { %2124 = vrot.lane.b32.xlu1 %v2116_v19, %s3101_s12  ;;  %v2665_v19 = vld [vmem:[%s3707_s8 + $0x38] sm:$0xff] }
0x162f   :  { %v2914_v27 = vpop.f32.mrf.mxu1  ;;  %2926 = vmatprep.subr.mxu1 %v2665_v19 }
0x1630   :  { %v2664_v27 = vld [vmem:[%s3707_s8 + $0x30] sm:$0xff]  ;;  %2927 = vmatpush3.msra.mxu1 %v2665_v19 }
0x1631   :  { %2928 = vmatprep.subr.mxu1 %v2664_v27 }
0x1632   :  { %2929 = vmatpush3.msra.mxu1 %v2664_v27 }
0x169c   :  { %v2123_v28 = vpop.permute.xlu1 %2122 }
0x169d   :  { %v2128_v29 = vsel %vm245_vm2, %v3548_v40, %v2123_v28  ;;  %v2663_v28 = vld [vmem:[%s3707_s8 + $0x28] sm:$0xff] }
0x169e   :  { %2923 = vmatprep.mubr.msk.f32.mxu0 %vm70_vm0, %v2128_v29  ;;  %2930 = vmatprep.subr.mxu1 %v2663_v28  ;;  %v2662_v29 = vld [vmem:[%s3707_s8 + $0x20] sm:$0xff] }
0x169f   :  { %2931 = vmatpush3.msra.mxu1 %v2663_v28 }
0x16a0   :  { %v2125_v7 = vpop.permute.xlu1 %2124  ;;  %2932 = vmatprep.subr.mxu1 %v2662_v29 }
0x16a1   :  { %v2129_v30 = vsel %vm245_vm2, %v3550_v43, %v2125_v7  ;;  %2933 = vmatpush3.msra.mxu1 %v2662_v29 }
0x16a2   :  { %2924 = vmatmul.mubr.msk.f32.vlgmr.msra.gmra.mxu0 %vm70_vm0, %v2129_v30 }
0x1762   :  { %v2925_v33 = vpop.f32.mrf.mxu0 }
0x1763   :  { %v2217_v34 = vadd.f32 %v2925_v33, %v2138_v32 }
0x1764   :  { %v2211_v36 = vpop.f32.mrf.mxu0 }
0x1765   :  { %v2212_v37 = vadd.f32 %v2211_v36, %v2138_v32  ;;  %v2221_v39 = vadd.f32 %v2217_v34, %v3481_v54 }
0x1767   :  { %v2225_v40 = vsel %vm70_vm0, %v2221_v39, 0.0  ;;  %v2220_v41 = vadd.f32 %v2212_v37, %v3479_v52  ;;  %v2291_v37 = vrot.slane %v3473_v42, %v1071_v44  ;;  %v2677_v44 = vld [vmem:[%s3709_s10 + $0x78] sm:$0xff] }
0x1768   :  { %2226 = vadd.xlane.f32.xlu1 %v2225_v40  ;;  %2937 = vmatprep.subr.mxu0 %v2677_v44 }
0x1769   :  { %v2222_v43 = vsel %vm70_vm0, %v2220_v41, 0.0  ;;  %2938 = vmatpush3.msra.mxu0 %v2677_v44 }
0x176a   :  { %2223 = vadd.xlane.f32.xlu0 %v2222_v43 }
0x17f1   :  { %v2227_v46 = vpop.xlane.xlu1 %2226 }
0x17f2   :  { %v2229_v47 = vmul.f32 0.03125, %v2227_v46 }
0x17f3   :  { %v2224_v48 = vpop.xlane.xlu0 %2223 }
0x17f4   :  { %v2228_v49 = vmul.f32 0.03125, %v2224_v48  ;;  %v2231_v50 = vsub.f32 %v2221_v39, %v2229_v47 }
0x17f6   :  { %v2230_v22 = vsub.f32 %v2220_v41, %v2228_v49  ;;  %v2233_v55 = vmul.f32 %v2231_v50, %v2231_v50  ;;  %v2297_v41 = vrot.slane %v3473_v42, %v1077_v45  ;;  %v2676_v45 = vld [vmem:[%s3709_s10 + $0x70] sm:$0xff] }
0x17f7   :  { %2939 = vmatprep.subr.mxu0 %v2676_v45 }
0x17f8   :  { %v2232_v51 = vmul.f32 %v2230_v22, %v2230_v22  ;;  %v2237_v54 = vsel %vm70_vm0, %v2233_v55, 0.0  ;;  %2940 = vmatpush3.msra.mxu0 %v2676_v45  ;;  %v2672_v55 = vld [vmem:[%s3709_s10 + $0x50] sm:$0xff] }
0x17fa   :  { %v2234_v38 = vsel %vm70_vm0, %v2232_v51, 0.0  ;;  %v2674_v51 = vld [vmem:[%s3709_s10 + $0x60] sm:$0xff] }
0x17fb   :  { %2235 = vadd.xlane.f32.xlu0 %v2234_v38  ;;  %v2673_v38 = vld [vmem:[%s3709_s10 + $0x58] sm:$0xff] }
0x17ff   :  { %2238 = vadd.xlane.f32.xlu0 %v2237_v54  ;;  %v2671_v54 = vld [vmem:[%s3709_s10 + $0x48] sm:$0xff] }
0x1884   :  { %v2236_v56 = vpop.xlane.xlu0 %2235 }
0x1885   :  { %v2240_v52 = vmul.f32 0.03125, %v2236_v56  ;;  %v2670_v56 = vld [vmem:[%s3709_s10 + $0x40] sm:$0xff] }
0x1887   :  { %v2242_v3 = vadd.f32 1e-12, %v2240_v52  ;;  %v2667_v52 = vld [vmem:[%s3708_s9 + $0x1] ss:$0 sm:$0xff] }
0x1888   :  { %v2239_v1 = vpop.xlane.xlu0 %2238 }
0x1889   :  { %3031 = vrsqrt.f32 %v2242_v3  ;;  %v2241_v59 = vmul.f32 0.03125, %v2239_v1 }
0x188b   :  { %v2243_v62 = vadd.f32 1e-12, %v2241_v59 }
0x188d   :  { %3033 = vrsqrt.f32 %v2243_v62 }
0x1896   :  { %v3032_v2 = vpop.eup %3031 }
0x1897   :  { %v2246_v5 = vmul.f32 %v3032_v2, %v2230_v22  ;;  %v2675_v22 = vld [vmem:[%s3709_s10 + $0x68] sm:$0xff] }
0x1898   :  { %2941 = vmatprep.subr.mxu0 %v2675_v22 }
0x1899   :  { %v2252_v16 = vmul.f32 %v2251_v12, %v2246_v5  ;;  %2942 = vmatpush3.msra.mxu0 %v2675_v22  ;;  %v2537_v22 = vrot.slane %v3473_v42, %v1315_v60 }
0x189a   :  { %v3034_v8 = vpop.eup %3033  ;;  %2943 = vmatprep.subr.mxu0 %v2674_v51 }
0x189b   :  { %v2258_v10 = vadd.f32 %v2257_v6, %v2252_v16  ;;  %v2247_v53 = vmul.f32 %v3034_v8, %v2231_v50  ;;  %2944 = vmatpush3.msra.mxu0 %v2674_v51 }
0x189c   :  { %2945 = vmatprep.subr.mxu0 %v2673_v38 }
0x189d   :  { %v3604_v11 = vadd.f32 %v2258_v10, %v3449_v20  ;;  %v2253_v13 = vmul.f32 %v2251_v12, %v2247_v53  ;;  %2946 = vmatpush3.msra.mxu0 %v2673_v38 }
0x189e   :  { %2947 = vmatprep.subr.mxu0 %v2672_v55 }
0x189f   :  { %v2262_v14 = vsel %vm70_vm0, %v3604_v11, 0.0  ;;  %v2259_v17 = vadd.f32 %v2257_v6, %v2253_v13  ;;  %2948 = vmatpush3.msra.mxu0 %v2672_v55 }
0x18a0   :  { %2263 = vadd.xlane.f32.xlu0 %v2262_v14  ;;  %2949 = vmatprep.subr.mxu0 %v2671_v54 }
0x18a1   :  { %v3609_v63 = vadd.f32 %v2259_v17, %v3444_v15  ;;  %2950 = vmatpush3.msra.mxu0 %v2671_v54  ;;  %v2543_v54 = vrot.slane %v3473_v42, %v1321_v61 }
0x18a2   :  { %2951 = vmatprep.subr.mxu0 %v2670_v56 }
0x18a3   :  { %v2265_v18 = vsel %vm70_vm0, %v3609_v63, 0.0  ;;  %2952 = vmatpush3.msra.mxu0 %v2670_v56 }
0x18a4   :  { %2266 = vadd.xlane.f32.xlu1 %v2265_v18 }
0x1929   :  { %v2264_v0 = vpop.xlane.xlu0 %2263 }
0x192a   :  { %v2268_v23 = vmul.f32 0.03125, %v2264_v0 }
0x192c   :  { %v2270_v57 = vsub.f32 %v3604_v11, %v2268_v23 }
0x192d   :  { %v2267_v58 = vpop.xlane.xlu1 %2266 }
0x192e   :  { %v2269_v20 = vmul.f32 0.03125, %v2267_v58  ;;  %v2272_v25 = vmul.f32 %v2270_v57, %v2270_v57 }
0x1930   :  { %v2271_v9 = vsub.f32 %v3609_v63, %v2269_v20  ;;  %v2274_v26 = vsel %vm70_vm0, %v2272_v25, 0.0 }
0x1931   :  { %2275 = vadd.xlane.f32.xlu0 %v2274_v26 }
0x1932   :  { %v2273_v31 = vmul.f32 %v2271_v9, %v2271_v9 }
0x1934   :  { %v2277_v15 = vsel %vm70_vm0, %v2273_v31, 0.0 }
0x1935   :  { %2278 = vadd.xlane.f32.xlu1 %v2277_v15 }
0x19ba   :  { %v2276_v7 = vpop.xlane.xlu0 %2275 }
0x19bb   :  { %v2280_v30 = vmul.f32 0.03125, %v2276_v7 }
0x19bd   :  { %v2282_v32 = vadd.f32 1e-12, %v2280_v30  ;;  %v3102_v30 = vmov 0  }
0x19be   :  { %v2279_v33 = vpop.xlane.xlu1 %2278  ;;  %2970 = vset.pattern.permute.xlu1 %v3102_v30  ;;  %2969 = vset.pattern.permute.xlu0 %v3102_v30 }
0x19bf   :  { %3035 = vrsqrt.f32 %v2282_v32  ;;  %v2281_v34 = vmul.f32 0.03125, %v2279_v33 }
0x19c1   :  { %v2283_v36 = vadd.f32 1e-12, %v2281_v34 }
0x19c3   :  { %3037 = vrsqrt.f32 %v2283_v36 }
0x19cc   :  { %v3036_v39 = vpop.eup %3035 }
0x19cd   :  { %v2286_v40 = vmul.f32 %v3036_v39, %v2270_v57 }
0x19cf   :  { %v2292_v43 = vmul.f32 %v2291_v37, %v2286_v40 }
0x19d0   :  { %v3038_v46 = vpop.eup %3037 }
0x19d1   :  { %v2287_v47 = vmul.f32 %v3038_v46, %v2271_v9  ;;  %v3635_v48 = vadd.f32 %v2297_v41, %v2292_v43  ;;  %v2424_v9 = vrot.slane %v3587_v35, %v3180_v24  ;;  %v2681_v43 = vld [vmem:[%s3701_s2 + $0x1] ss:$0 sm:$0xff]  ;;  %v2680_v46 = vld [vmem:[%s3701_s2] ss:$0 sm:$0xff]  ;;  %s3103_s2 = smov [#allocation5]  }
0x19d2   :  { %s2601_s12 = sshll.u32 %s3103_s2, 4  ;;  %s2602_s12 = int_to_ptr.vmem [resolvable:$true] %s2601_s12 }
0x19d3   :  { %v2293_v49 = vmul.f32 %v2291_v37, %v2287_v47  ;;  %2934 = vmatprep.mubr.msk.f32.mxu1 %vm70_vm0, %v3635_v48  ;;  %s3067_s25 = scalar_lea.vmem %s2602_s12, 32  ;;  %p3072_p6 = scmp.lt.s32.totalorder %s2602_s12, %s2602_s12 }
0x19d4   :  { %p3068_p5 = scmp.ne.s32.totalorder %s2602_s12, %s3067_s25  ;;  %p3073_p7 = scmp.lt.s32.totalorder %s3067_s25, %s3067_s25 }
0x19d5   :  { %v2299_v50 = vadd.f32 %v2297_v41, %v2293_v49 }
0x19d6   :  { %p3074_p8 = por %p3073_p7, %p3072_p6 }
0x19d7   :  { %2935 = vmatmul.mubr.msk.f32.vlgmr.msra.gmra.mxu1 %vm70_vm0, %v2299_v50 }
0x19d8   :  { %p3075_p9 = pnand %p3074_p8, %p3068_p5 }
0x1a97   :  { %v2936_v3 = vpop.f32.mrf.mxu1 }
0x1a98   :  { %v2391_v1 = vadd.f32 %v2936_v3, %v2667_v52 }
0x1a99   :  { %v2385_v59 = vpop.f32.mrf.mxu1 }
0x1a9a   :  { %v2395_v62 = vmul.f32 %v2391_v1, %v2391_v1  ;;  %v2386_v12 = vadd.f32 %v2667_v52, %v2385_v59 }
0x1a9c   :  { %v2397_v2 = vmul.f32 %v2395_v62, %v2391_v1  ;;  %v2394_v5 = vmul.f32 %v2386_v12, %v2386_v12 }
0x1a9e   :  { %v2399_v6 = vmul.f32 0.044715, %v2397_v2  ;;  %v2396_v16 = vmul.f32 %v2394_v5, %v2386_v12 }
0x1aa0   :  { %v2401_v8 = vadd.f32 %v2399_v6, %v2391_v1  ;;  %v2398_v10 = vmul.f32 0.044715, %v2396_v16 }
0x1aa2   :  { %v2403_v53 = vmul.f32 0.7978846, %v2401_v8  ;;  %v2400_v13 = vadd.f32 %v2398_v10, %v2386_v12 }
0x1aa4   :  { %3039 = vtanh.f32 %v2403_v53  ;;  %v2402_v14 = vmul.f32 0.7978846, %v2400_v13 }
0x1aa6   :  { %3041 = vtanh.f32 %v2402_v14 }
0x1ab1   :  { %v3040_v17 = vpop.eup %3039 }
0x1ab2   :  { %v2407_v18 = vadd.f32 1.0, %v3040_v17 }
0x1ab3   :  { %v3042_v0 = vpop.eup %3041 }
0x1ab4   :  { %v2406_v23 = vadd.f32 1.0, %v3042_v0  ;;  %v2409_v57 = vmul.f32 0.5, %v2407_v18 }
0x1ab6   :  { %v2408_v58 = vmul.f32 0.5, %v2406_v23  ;;  %v2411_v25 = vmul.f32 %v2409_v57, %v2391_v1 }
0x1ab8   :  { %v2410_v20 = vmul.f32 %v2408_v58, %v2386_v12 }
0x1aba   :  { %2953 = vmatprep.mubr.msk.f32.mxu0 %vm1203_vm4, %v2410_v20 }
0x1abb   :  { %2954 = vmatmul.mubr.msk.f32.vlgmr.msra.gmra.mxu0 %vm1203_vm4, %v2411_v25 }
0x1b7b   :  { %v2955_v26 = vpop.f32.mrf.mxu0 }
0x1b7c   :  { %v2503_v31 = vadd.f32 %v2955_v26, %v2424_v9 }
0x1b7d   :  { %v2497_v15 = vpop.f32.mrf.mxu0 }
0x1b7e   :  { %v2498_v19 = vadd.f32 %v2497_v15, %v2424_v9  ;;  %v2507_v27 = vadd.f32 %v2503_v31, %v2299_v50 }
0x1b80   :  { %v2511_v28 = vsel %vm70_vm0, %v2507_v27, 0.0  ;;  %v2506_v29 = vadd.f32 %v2498_v19, %v3635_v48 }
0x1b81   :  { %2512 = vadd.xlane.f32.xlu1 %v2511_v28 }
0x1b82   :  { %v2508_v7 = vsel %vm70_vm0, %v2506_v29, 0.0 }
0x1b83   :  { %2509 = vadd.xlane.f32.xlu0 %v2508_v7 }
0x1c0a   :  { %v2513_v32 = vpop.xlane.xlu1 %2512 }
0x1c0b   :  { %v2515_v33 = vmul.f32 0.03125, %v2513_v32 }
0x1c0c   :  { %v2510_v34 = vpop.xlane.xlu0 %2509 }
0x1c0d   :  { %v2517_v24 = vsub.f32 %v2507_v27, %v2515_v33  ;;  %v2514_v35 = vmul.f32 0.03125, %v2510_v34 }
0x1c0f   :  { %v2516_v36 = vsub.f32 %v2506_v29, %v2514_v35  ;;  %v2519_v37 = vmul.f32 %v2517_v24, %v2517_v24 }
0x1c11   :  { %v2523_v39 = vsel %vm70_vm0, %v2519_v37, 0.0  ;;  %v2518_v40 = vmul.f32 %v2516_v36, %v2516_v36 }
0x1c12   :  { %2524 = vadd.xlane.f32.xlu1 %v2523_v39 }
0x1c13   :  { %v2520_v41 = vsel %vm70_vm0, %v2518_v40, 0.0 }
0x1c14   :  { %2521 = vadd.xlane.f32.xlu0 %v2520_v41 }
0x1c23   :  { %2564 = vperm.xlu1 %2970, %v2681_v43  }
0x1c2a   :  { %2561 = vperm.xlu0 %2969, %v2680_v46  }
0x1c9b   :  { %v2525_v47 = vpop.xlane.xlu1 %2524 }
0x1c9c   :  { %v2527_v48 = vmul.f32 0.03125, %v2525_v47 }
0x1c9d   :  { %v2522_v49 = vpop.xlane.xlu0 %2521 }
0x1c9e   :  { %v2529_v50 = vadd.f32 1e-12, %v2527_v48  ;;  %v2526_v44 = vmul.f32 0.03125, %v2522_v49 }
0x1c9f   :  { %v2565_v38 = vpop.permute.xlu1 %2564 }
0x1ca0   :  { %3043 = vrsqrt.f32 %v2529_v50  ;;  %v2528_v45 = vadd.f32 1e-12, %v2526_v44  ;;  %vm2567_vm5 = vcmp.eq.s32.totalorder %v3171_v21, %v2565_v38 }
0x1ca1   :  { %v2683_v12 = vsel %vm2567_vm5, 1.0, %v3094_v4 }
0x1ca2   :  { %3045 = vrsqrt.f32 %v2528_v45 }
0x1ca5   :  { %v2562_v52 = vpop.permute.xlu0 %2561 }
0x1ca6   :  { %vm2566_vm6 = vcmp.eq.s32.totalorder %v3171_v21, %v2562_v52 }
0x1ca7   :  { %v2682_v5 = vsel %vm2566_vm6, 1.0, %v3094_v4 }
0x1cad   :  { %v3044_v51 = vpop.eup %3043 }
0x1cae   :  { %v2533_v55 = vmul.f32 %v3044_v51, %v2517_v24 }
0x1caf   :  { %v3046_v56 = vpop.eup %3045 }
0x1cb0   :  { %v2539_v3 = vmul.f32 %v2537_v22, %v2533_v55  ;;  %v2532_v1 = vmul.f32 %v3046_v56, %v2516_v36 }
0x1cb2   :  { %v2545_v59 = vadd.f32 %v2543_v54, %v2539_v3  ;;  %v2538_v62 = vmul.f32 %v2537_v22, %v2532_v1 }
0x1cb4   :  { %v2547_v60 = vadd.f32 %v2545_v59, %v3609_v63  ;;  %v2544_v2 = vadd.f32 %v2543_v54, %v2538_v62 }
0x1cb6   :  { %v2573_v6 = vmul.f32 %v2683_v12, %v2547_v60  ;;  %v2546_v61 = vadd.f32 %v2544_v2, %v3604_v11 }
0x1cb8   :  { %v2581_v42 = vsel %vm70_vm0, %v2573_v6, 0.0  ;;  %v2572_v16 = vmul.f32 %v2682_v5, %v2546_v61 }
0x1cb9   :  { %v2582_v8 = vrot.slane %v2581_v42, 4 }
0x1cba   :  { %v2574_v10 = vsel %vm70_vm0, %v2572_v16, 0.0 }
0x1cbb   :  { %v2583_v53 = vadd.f32 %v2582_v8, %v2581_v42  ;;  %v2575_v13 = vrot.slane %v2574_v10, 4 }
0x1cbd   :  { %v2584_v14 = vrot.slane %v2583_v53, 2  ;;  %v2576_v21 = vadd.f32 %v2575_v13, %v2574_v10 }
0x1cbf   :  { %v2585_v17 = vadd.f32 %v2584_v14, %v2583_v53  ;;  %v2577_v18 = vrot.slane %v2576_v21, 2 }
0x1cc1   :  { %v2586_v0 = vrot.slane %v2585_v17, 1  ;;  %v2578_v63 = vadd.f32 %v2577_v18, %v2576_v21 }
0x1cc3   :  { %v2579_v23 = vrot.slane %v2578_v63, 1  ;;  %v2587_v11 = vadd.f32 %v2586_v0, %v2585_v17 }
0x1cc5   :  { %v2580_v4 = vadd.f32 %v2579_v23, %v2578_v63 }
0x1cc7   :  { %v2591_v57 = vsel %vm2590_vm7, %v2587_v11, %v2580_v4 }
0x1cc8   :  { %2594 = vst.msk [vmem:[#allocation5] sm:$0x3] %vm2593_vm8, %v2591_v57 }
0x1cc9   :  { %3078 = shalt.err (!%p3075_p9)
}
0x1cca   :  { %2604 = dma.vmem_to_hbm [thread:$0]  %s2602_s12, 32, %s3710_s11, [#allocation4]  }
0x1ccb   :  { %3089 = dma.done.wait [#allocation4], 32  }
0x1ccc   :  { %3090 = vsyncadd [#allocation4], 4294967264 }
0x1ccd   :  { %2608 = vsyncpa [#allocation3], 1 }
0x1cce   :  { %2609 = vsyncpa [#allocation4], 1 }

</bundles_post_ra>
